<compile_context>
chip_gen: v7x
topology: tpu7x:2x2x1
jax: 0.10.0
libtpu: 0.0.40
codegen_flags: <defaults>
</compile_context>

<pallas_src>
import jax
import jax.numpy as jnp
from jax import lax
from jax.experimental import pallas as pl
from jax.experimental.pallas import tpu as pltpu

# ----------------------------- synthetic "opt" ------------------------------
B = 2                      # batch
N = 64                     # query points per batch element
CP = 16                    # opt.triplane_dim (channels per plane)
H = W = 16                 # opt.triplane_res
HW = H * W
VIEW_FREQ = 2              # opt.view_freq
DVIEW = 3 + 3 * 2 * VIEW_FREQ        # 15 (include_input + sin/cos per freq)
HD = 32                    # density MLP hidden:  [CP, HD, 1]
HC = 32                    # color MLP hidden:    [CP + DVIEW, HC, 3]
BBOX = ((-1.5, 1.5), (-1.5, 1.5), (-1.5, 1.5))   # opt.bbox
COMBOS = ((1, 2), (0, 2), (0, 1))                # (x, y) grid axes per plane
FREQ_BANDS = tuple(float(2.0 ** k) for k in range(VIEW_FREQ))  # log-sampled


# --------------------------------- kernel -----------------------------------
def head_kernel(pts_ref, view_ref, planes_ref,
                wd1t_ref, bd1t_ref, wd2_ref, bd2_ref,
                wc1t_ref, bc1t_ref, wc2t_ref, bc2t_ref,
                out_ref):
    pts = pts_ref[0]          # (3, N) query points (channels-major)
    vd = view_ref[0]          # (3, N) view directions

    # bbox normalization -> [-1, 1]; each coordinate kept as a (1, N) row.
    coords = []
    for i in range(3):
        mid = 0.5 * (BBOX[i][0] + BBOX[i][1])
        inv_half = 1.0 / (0.5 * (BBOX[i][1] - BBOX[i][0]))
        coords.append((pts[i:i + 1, :] - mid) * inv_half)            # (1, N)

    # Tiny per-axis iotas (the old (N, HW) iota + // and % are gone).
    iota_h = lax.broadcasted_iota(jnp.int32, (H, N), 0)
    iota_w = lax.broadcasted_iota(jnp.int32, (W, N), 0)

    # triplane bilinear sampling (grid_sample, align_corners=True, zeros pad)
    featT = jnp.zeros((CP, N), jnp.float32)
    for k in range(3):
        xi, yi = COMBOS[k]
        gx = coords[xi]                                              # (1, N)
        gy = coords[yi]
        u = (gx + 1.0) * (0.5 * (W - 1))                             # pixel x
        v = (gy + 1.0) * (0.5 * (H - 1))                             # pixel y
        x0 = jnp.floor(u)
        y0 = jnp.floor(v)
        wx1 = u - x0
        wx0 = 1.0 - wx1
        wy1 = v - y0
        wy0 = 1.0 - wy1
        x0i = x0.astype(jnp.int32)
        y0i = y0.astype(jnp.int32)
        # Separable bilinear weights.  Exact because x1 = x0 + 1 / y1 = y0 + 1
        # make the two col (row) masks disjoint; out-of-range corners never
        # match the iota -> zero padding, matching grid_sample(zeros).
        colW = (wx0 * (iota_w == x0i).astype(jnp.float32)
                + wx1 * (iota_w == x0i + 1).astype(jnp.float32))     # (W, N)
        rowW = (wy0 * (iota_h == y0i).astype(jnp.float32)
                + wy1 * (iota_h == y0i + 1).astype(jnp.float32))     # (H, N)
        onehotT = (rowW[:, None, :] * colW[None, :, :]).reshape(HW, N)
        # plane is consumed in its native NCHW flattening: (CP, HW) @ (HW, N)
        featT = featT + jnp.dot(planes_ref[0, k], onehotT,
                                preferred_element_type=jnp.float32)

    # view embedding rows: [d, sin(d*f0), cos(d*f0), sin(d*f1), cos(d*f1)]
    emb_rows = [vd]
    for f in FREQ_BANDS:
        emb_rows.append(jnp.sin(vd * f))
        emb_rows.append(jnp.cos(vd * f))

    # density MLP: Linear -> ReLU, then layer-2 (out width 1) as a VPU reduce.
    hdT = jnp.maximum(
        jnp.dot(wd1t_ref[...], featT, preferred_element_type=jnp.float32)
        + bd1t_ref[...], 0.0)                                        # (HD, N)
    densT = (jnp.sum(hdT * wd2_ref[...], axis=0, keepdims=True)
             + bd2_ref[...])                                         # (1, N)

    # color MLP: ONE fused layer-1 dot over concat([feature, view_embedding]).
    cinT = jnp.concatenate([featT] + emb_rows, axis=0)               # (CP+DVIEW, N)
    hcT = jnp.maximum(
        jnp.dot(wc1t_ref[...], cinT, preferred_element_type=jnp.float32)
        + bc1t_ref[...], 0.0)                                        # (HC, N)
    colT = (jnp.dot(wc2t_ref[...], hcT, preferred_element_type=jnp.float32)
            + bc2t_ref[...])                                         # (3, N)

    # lane-dense packed output: row 0 = density, rows 1:4 = color.
    out_ref[0] = jnp.concatenate([densT, colT], axis=0)              # (4, N)


# -------------------------------- wrapper ------------------------------------
@jax.jit
def head_forward(query_pts, query_viewdirs, triplane, params):
    """query_pts/viewdirs: (B, 3, N); triplane: (B, 3*CP, H, W)  (NCHW).
    Returns density (B, 1, N), color (B, 3, N)  (PyTorch convention)."""
    wd1, bd1, wd2, bd2, wc1, bc1, wc2, bc2 = params
    Bq = query_pts.shape[0]

    # Free reshape of the NCHW triplane -- no HBM relayout / transpose.
    planes = triplane.reshape(Bq, 3, CP, HW)

    # Tiny transposed parameter views (constant-folded under jit).
    wd1t = wd1.T                         # (HD, CP)
    bd1t = bd1.reshape(HD, 1)
    wd2c = wd2.reshape(HD, 1)
    bd2c = bd2.reshape(1, 1)
    wc1t = wc1.T                         # (HC, CP + DVIEW)
    bc1t = bc1.reshape(HC, 1)
    wc2t = wc2.T                         # (3, HC)
    bc2t = bc2.reshape(3, 1)

    grid_spec = pltpu.PrefetchScalarGridSpec(
        num_scalar_prefetch=0,
        grid=(Bq,),                      # parallel over batch -> 2 TCs on v7x
        in_specs=[
            pl.BlockSpec((1, 3, N), lambda b: (b, 0, 0)),
            pl.BlockSpec((1, 3, N), lambda b: (b, 0, 0)),
            pl.BlockSpec((1, 3, CP, HW), lambda b: (b, 0, 0, 0)),
            pl.BlockSpec((HD, CP), lambda b: (0, 0)),
            pl.BlockSpec((HD, 1), lambda b: (0, 0)),
            pl.BlockSpec((HD, 1), lambda b: (0, 0)),
            pl.BlockSpec((1, 1), lambda b: (0, 0)),
            pl.BlockSpec((HC, CP + DVIEW), lambda b: (0, 0)),
            pl.BlockSpec((HC, 1), lambda b: (0, 0)),
            pl.BlockSpec((3, HC), lambda b: (0, 0)),
            pl.BlockSpec((3, 1), lambda b: (0, 0)),
        ],
        out_specs=pl.BlockSpec((1, 4, N), lambda b: (b, 0, 0)),
    )
    out = pl.pallas_call(
        head_kernel,
        out_shape=jax.ShapeDtypeStruct((Bq, 4, N), jnp.float32),
        grid_spec=grid_spec,
        compiler_params=pltpu.CompilerParams(
            dimension_semantics=("parallel",)),
    )(query_pts, query_viewdirs, planes,
      wd1t, bd1t, wd2c, bd2c, wc1t, bc1t, wc2t, bc2t)

    density = out[:, 0:1, :]             # (B, 1, N)
    color = out[:, 1:4, :]               # (B, 3, N)
    return density, color


# ---------------------- pure-JAX reference (validation) ----------------------
def reference(query_pts, query_viewdirs, triplane, params):
    wd1, bd1, wd2, bd2, wc1, bc1, wc2, bc2 = params
    hp = lax.Precision.HIGHEST           # keep the reference in true f32
    Bq, _, Nq = query_pts.shape
    planes = triplane.reshape(Bq, 3, CP, H, W)
    dens_out, col_out = [], []
    for b in range(Bq):
        pts = query_pts[b].T             # (N, 3)
        vd = query_viewdirs[b].T         # (N, 3)
        coords = [(pts[:, i] - 0.5 * (BBOX[i][0] + BBOX[i][1]))
                  / (0.5 * (BBOX[i][1] - BBOX[i][0])) for i in range(3)]
        feat = jnp.zeros((Nq, CP), jnp.float32)
        for k in range(3):
            xi, yi = COMBOS[k]
            u = (coords[xi] + 1.0) * 0.5 * (W - 1)
            v = (coords[yi] + 1.0) * 0.5 * (H - 1)
            x0 = jnp.floor(u)
            y0 = jnp.floor(v)
            wx1 = u - x0
            wy1 = v - y0
            x0i = x0.astype(jnp.int32)
            y0i = y0.astype(jnp.int32)
            plane = planes[b, k]         # (CP, H, W)

            def tap(yy, xx, plane=plane):
                valid = ((yy >= 0) & (yy < H) & (xx >= 0) & (xx < W)
                         ).astype(jnp.float32)
                vals = plane[:, jnp.clip(yy, 0, H - 1), jnp.clip(xx, 0, W - 1)]
                return vals * valid[None, :]

            s = (tap(y0i, x0i) * ((1 - wy1) * (1 - wx1))[None]
                 + tap(y0i, x0i + 1) * ((1 - wy1) * wx1)[None]
                 + tap(y0i + 1, x0i) * (wy1 * (1 - wx1))[None]
                 + tap(y0i + 1, x0i + 1) * (wy1 * wx1)[None])
            feat = feat + s.T
        emb = jnp.concatenate(
            [vd] + [fn(vd * f) for f in FREQ_BANDS for fn in (jnp.sin, jnp.cos)],
            axis=-1)
        hd = jax.nn.relu(jnp.dot(feat, wd1, precision=hp) + bd1)
        dens = jnp.dot(hd, wd2, precision=hp) + bd2
        cin = jnp.concatenate([feat, emb], axis=-1)
        hc = jax.nn.relu(jnp.dot(cin, wc1, precision=hp) + bc1)
        col = jnp.dot(hc, wc2, precision=hp) + bc2
        dens_out.append(dens.T)
        col_out.append(col.T)
    return jnp.stack(dens_out), jnp.stack(col_out)


# ---------------------------------- main -------------------------------------
if __name__ == "__main__":
    keys = jax.random.split(jax.random.PRNGKey(0), 12)

    query_pts = jax.random.uniform(keys[0], (B, 3, N), jnp.float32,
                                   minval=-1.0, maxval=1.0)
    vdirs = jax.random.normal(keys[1], (B, 3, N), jnp.float32)
    vdirs = vdirs / jnp.linalg.norm(vdirs, axis=1, keepdims=True)
    triplane = jax.random.normal(keys[2], (B, 3 * CP, H, W), jnp.float32) * 0.5

    # deterministic synthetic MLP parameters (PyTorch Linear orientation)
    wd1 = jax.random.normal(keys[3], (CP, HD), jnp.float32) * 0.2
    bd1 = jax.random.normal(keys[4], (HD,), jnp.float32) * 0.05
    wd2 = jax.random.normal(keys[5], (HD, 1), jnp.float32) * 0.2
    bd2 = jax.random.normal(keys[6], (1,), jnp.float32) * 0.05
    wc1 = jax.random.normal(keys[7], (CP + DVIEW, HC), jnp.float32) * 0.2
    bc1 = jax.random.normal(keys[8], (HC,), jnp.float32) * 0.05
    wc2 = jax.random.normal(keys[9], (HC, 3), jnp.float32) * 0.2
    bc2 = jax.random.normal(keys[10], (3,), jnp.float32) * 0.05

    params = (wd1, bd1, wd2, bd2, wc1, bc1, wc2, bc2)

    density, color = head_forward(query_pts, vdirs, triplane, params)
    jax.block_until_ready((density, color))

    d_ref, c_ref = reference(query_pts, vdirs, triplane, params)
    assert density.shape == (B, 1, N) and color.shape == (B, 3, N)
    # Tolerance reflects TPU-default (bf16-operand) matmul precision inside the
    # kernel vs. the f32 reference (review: drop the global 'highest' precision
    # which forced 6 MXU passes per dot).
    assert jnp.allclose(density, d_ref, atol=1e-2, rtol=1e-2), "density mismatch"
    assert jnp.allclose(color, c_ref, atol=1e-2, rtol=1e-2), "color mismatch"

    print("KERNEL_OK")
</pallas_src>

<mosaic_0001>
module attributes {stable_mosaic.version = 11 : i64} {
  func.func @head_kernel(%arg0: i32, %arg1: memref<1x3x64xf32, #tpu.memory_space<vmem>>, %arg2: memref<1x3x64xf32, #tpu.memory_space<vmem>>, %arg3: memref<1x3x16x256xf32, #tpu.memory_space<vmem>>, %arg4: memref<32x16xf32, #tpu.memory_space<vmem>>, %arg5: memref<32x1xf32, #tpu.memory_space<vmem>>, %arg6: memref<32x1xf32, #tpu.memory_space<vmem>>, %arg7: memref<1x1xf32, #tpu.memory_space<vmem>>, %arg8: memref<32x31xf32, #tpu.memory_space<vmem>>, %arg9: memref<32x1xf32, #tpu.memory_space<vmem>>, %arg10: memref<3x32xf32, #tpu.memory_space<vmem>>, %arg11: memref<3x1xf32, #tpu.memory_space<vmem>>, %arg12: memref<1x4x64xf32, #tpu.memory_space<vmem>>) attributes {dimension_semantics = [#tpu.dimension_semantics<parallel>], iteration_bounds = array<i64: 2>, scalar_prefetch = 0 : i64, scratch_operands = 0 : i64, tpu.core_type = #tpu.core_type<tc>, window_params = [{transform_indices = @transform_0, window_bounds = array<i64: 1, 3, 64>}, {transform_indices = @transform_1, window_bounds = array<i64: 1, 3, 64>}, {transform_indices = @transform_2, window_bounds = array<i64: 1, 3, 16, 256>}, {pipeline_mode = #tpu.pipeline_mode<synchronous>, transform_indices = @transform_3, window_bounds = array<i64: 32, 16>}, {pipeline_mode = #tpu.pipeline_mode<synchronous>, transform_indices = @transform_4, window_bounds = array<i64: 32, 1>}, {pipeline_mode = #tpu.pipeline_mode<synchronous>, transform_indices = @transform_5, window_bounds = array<i64: 32, 1>}, {pipeline_mode = #tpu.pipeline_mode<synchronous>, transform_indices = @transform_6, window_bounds = array<i64: 1, 1>}, {pipeline_mode = #tpu.pipeline_mode<synchronous>, transform_indices = @transform_7, window_bounds = array<i64: 32, 31>}, {pipeline_mode = #tpu.pipeline_mode<synchronous>, transform_indices = @transform_8, window_bounds = array<i64: 32, 1>}, {pipeline_mode = #tpu.pipeline_mode<synchronous>, transform_indices = @transform_9, window_bounds = array<i64: 3, 32>}, {pipeline_mode = #tpu.pipeline_mode<synchronous>, transform_indices = @transform_10, window_bounds = array<i64: 3, 1>}, {transform_indices = @transform_11, window_bounds = array<i64: 1, 4, 64>}]} {
    %c0 = arith.constant 0 : index
    %c0_0 = arith.constant 0 : index
    %c0_1 = arith.constant 0 : index
    %0 = vector.load %arg1[%c0, %c0_0, %c0_1] : memref<1x3x64xf32, #tpu.memory_space<vmem>>, vector<1x3x64xf32>
    %1 = vector.shape_cast %0 : vector<1x3x64xf32> to vector<3x64xf32>
    %c0_2 = arith.constant 0 : index
    %c0_3 = arith.constant 0 : index
    %c0_4 = arith.constant 0 : index
    %2 = vector.load %arg2[%c0_2, %c0_3, %c0_4] : memref<1x3x64xf32, #tpu.memory_space<vmem>>, vector<1x3x64xf32>
    %3 = vector.shape_cast %2 : vector<1x3x64xf32> to vector<3x64xf32>
    %4 = vector.extract_strided_slice %1 {offsets = [0, 0], sizes = [1, 64], strides = [1, 1]} : vector<3x64xf32> to vector<1x64xf32>
    %cst = arith.constant 0.000000e+00 : f32
    %5 = vector.broadcast %cst : f32 to vector<1x64xf32>
    %6 = arith.subf %4, %5 : vector<1x64xf32>
    %cst_5 = arith.constant 0.666666686 : f32
    %7 = vector.broadcast %cst_5 : f32 to vector<1x64xf32>
    %8 = arith.mulf %6, %7 : vector<1x64xf32>
    %9 = vector.extract_strided_slice %1 {offsets = [1, 0], sizes = [1, 64], strides = [1, 1]} : vector<3x64xf32> to vector<1x64xf32>
    %cst_6 = arith.constant 0.000000e+00 : f32
    %10 = vector.broadcast %cst_6 : f32 to vector<1x64xf32>
    %11 = arith.subf %9, %10 : vector<1x64xf32>
    %cst_7 = arith.constant 0.666666686 : f32
    %12 = vector.broadcast %cst_7 : f32 to vector<1x64xf32>
    %13 = arith.mulf %11, %12 : vector<1x64xf32>
    %14 = vector.extract_strided_slice %1 {offsets = [2, 0], sizes = [1, 64], strides = [1, 1]} : vector<3x64xf32> to vector<1x64xf32>
    %cst_8 = arith.constant 0.000000e+00 : f32
    %15 = vector.broadcast %cst_8 : f32 to vector<1x64xf32>
    %16 = arith.subf %14, %15 : vector<1x64xf32>
    %cst_9 = arith.constant 0.666666686 : f32
    %17 = vector.broadcast %cst_9 : f32 to vector<1x64xf32>
    %18 = arith.mulf %16, %17 : vector<1x64xf32>
    %19 = tpu.iota {dimensions = array<i32: 0>} : vector<16x64xi32>
    %20 = tpu.iota {dimensions = array<i32: 0>} : vector<16x64xi32>
    %cst_10 = arith.constant 0.000000e+00 : f32
    %21 = vector.broadcast %cst_10 : f32 to vector<16x64xf32>
    %cst_11 = arith.constant 1.000000e+00 : f32
    %22 = vector.broadcast %cst_11 : f32 to vector<1x64xf32>
    %23 = arith.addf %13, %22 : vector<1x64xf32>
    %cst_12 = arith.constant 7.500000e+00 : f32
    %24 = vector.broadcast %cst_12 : f32 to vector<1x64xf32>
    %25 = arith.mulf %23, %24 : vector<1x64xf32>
    %cst_13 = arith.constant 1.000000e+00 : f32
    %26 = vector.broadcast %cst_13 : f32 to vector<1x64xf32>
    %27 = arith.addf %18, %26 : vector<1x64xf32>
    %cst_14 = arith.constant 7.500000e+00 : f32
    %28 = vector.broadcast %cst_14 : f32 to vector<1x64xf32>
    %29 = arith.mulf %27, %28 : vector<1x64xf32>
    %30 = math.floor %25 : vector<1x64xf32>
    %31 = math.floor %29 : vector<1x64xf32>
    %32 = arith.subf %25, %30 : vector<1x64xf32>
    %cst_15 = arith.constant 1.000000e+00 : f32
    %33 = vector.broadcast %cst_15 : f32 to vector<1x64xf32>
    %34 = arith.subf %33, %32 : vector<1x64xf32>
    %35 = arith.subf %29, %31 : vector<1x64xf32>
    %cst_16 = arith.constant 1.000000e+00 : f32
    %36 = vector.broadcast %cst_16 : f32 to vector<1x64xf32>
    %37 = arith.subf %36, %35 : vector<1x64xf32>
    %38 = arith.fptosi %30 : vector<1x64xf32> to vector<1x64xi32>
    %39 = arith.fptosi %31 : vector<1x64xf32> to vector<1x64xi32>
    %40 = vector.broadcast %38 : vector<1x64xi32> to vector<16x64xi32>
    %41 = arith.cmpi eq, %20, %40 : vector<16x64xi32>
    %42 = arith.extui %41 : vector<16x64xi1> to vector<16x64xi32>
    %43 = arith.sitofp %42 : vector<16x64xi32> to vector<16x64xf32>
    %44 = vector.broadcast %34 : vector<1x64xf32> to vector<16x64xf32>
    %45 = arith.mulf %44, %43 : vector<16x64xf32>
    %c1_i32 = arith.constant 1 : i32
    %46 = vector.broadcast %c1_i32 : i32 to vector<1x64xi32>
    %47 = arith.addi %38, %46 : vector<1x64xi32>
    %48 = vector.broadcast %47 : vector<1x64xi32> to vector<16x64xi32>
    %49 = arith.cmpi eq, %20, %48 : vector<16x64xi32>
    %50 = arith.extui %49 : vector<16x64xi1> to vector<16x64xi32>
    %51 = arith.sitofp %50 : vector<16x64xi32> to vector<16x64xf32>
    %52 = vector.broadcast %32 : vector<1x64xf32> to vector<16x64xf32>
    %53 = arith.mulf %52, %51 : vector<16x64xf32>
    %54 = arith.addf %45, %53 : vector<16x64xf32>
    %55 = vector.broadcast %39 : vector<1x64xi32> to vector<16x64xi32>
    %56 = arith.cmpi eq, %19, %55 : vector<16x64xi32>
    %57 = arith.extui %56 : vector<16x64xi1> to vector<16x64xi32>
    %58 = arith.sitofp %57 : vector<16x64xi32> to vector<16x64xf32>
    %59 = vector.broadcast %37 : vector<1x64xf32> to vector<16x64xf32>
    %60 = arith.mulf %59, %58 : vector<16x64xf32>
    %c1_i32_17 = arith.constant 1 : i32
    %61 = vector.broadcast %c1_i32_17 : i32 to vector<1x64xi32>
    %62 = arith.addi %39, %61 : vector<1x64xi32>
    %63 = vector.broadcast %62 : vector<1x64xi32> to vector<16x64xi32>
    %64 = arith.cmpi eq, %19, %63 : vector<16x64xi32>
    %65 = arith.extui %64 : vector<16x64xi1> to vector<16x64xi32>
    %66 = arith.sitofp %65 : vector<16x64xi32> to vector<16x64xf32>
    %67 = vector.broadcast %35 : vector<1x64xf32> to vector<16x64xf32>
    %68 = arith.mulf %67, %66 : vector<16x64xf32>
    %69 = arith.addf %60, %68 : vector<16x64xf32>
    %70 = vector.shape_cast %69 : vector<16x64xf32> to vector<16x1x64xf32>
    %71 = vector.shape_cast %54 : vector<16x64xf32> to vector<1x16x64xf32>
    %72 = vector.broadcast %70 : vector<16x1x64xf32> to vector<16x16x64xf32>
    %73 = vector.broadcast %71 : vector<1x16x64xf32> to vector<16x16x64xf32>
    %74 = arith.mulf %72, %73 : vector<16x16x64xf32>
    %75 = vector.shape_cast %74 : vector<16x16x64xf32> to vector<256x64xf32>
    %c0_18 = arith.constant 0 : index
    %c0_19 = arith.constant 0 : index
    %c0_20 = arith.constant 0 : index
    %c0_21 = arith.constant 0 : index
    %76 = vector.load %arg3[%c0_18, %c0_19, %c0_20, %c0_21] : memref<1x3x16x256xf32, #tpu.memory_space<vmem>>, vector<1x1x16x256xf32>
    %77 = vector.shape_cast %76 : vector<1x1x16x256xf32> to vector<16x256xf32>
    %cst_22 = arith.constant dense<0.000000e+00> : vector<16x64xf32>
    %78 = tpu.matmul %77, %75, %cst_22 {dimension_numbers = #tpu.dot_dimension_numbers<[1], [0], [0], [1], [0, 0, 1, 1], [], []>} : vector<16x256xf32>, vector<256x64xf32>, vector<16x64xf32> -> vector<16x64xf32>
    %79 = arith.addf %21, %78 : vector<16x64xf32>
    %cst_23 = arith.constant 1.000000e+00 : f32
    %80 = vector.broadcast %cst_23 : f32 to vector<1x64xf32>
    %81 = arith.addf %8, %80 : vector<1x64xf32>
    %cst_24 = arith.constant 7.500000e+00 : f32
    %82 = vector.broadcast %cst_24 : f32 to vector<1x64xf32>
    %83 = arith.mulf %81, %82 : vector<1x64xf32>
    %cst_25 = arith.constant 1.000000e+00 : f32
    %84 = vector.broadcast %cst_25 : f32 to vector<1x64xf32>
    %85 = arith.addf %18, %84 : vector<1x64xf32>
    %cst_26 = arith.constant 7.500000e+00 : f32
    %86 = vector.broadcast %cst_26 : f32 to vector<1x64xf32>
    %87 = arith.mulf %85, %86 : vector<1x64xf32>
    %88 = math.floor %83 : vector<1x64xf32>
    %89 = math.floor %87 : vector<1x64xf32>
    %90 = arith.subf %83, %88 : vector<1x64xf32>
    %cst_27 = arith.constant 1.000000e+00 : f32
    %91 = vector.broadcast %cst_27 : f32 to vector<1x64xf32>
    %92 = arith.subf %91, %90 : vector<1x64xf32>
    %93 = arith.subf %87, %89 : vector<1x64xf32>
    %cst_28 = arith.constant 1.000000e+00 : f32
    %94 = vector.broadcast %cst_28 : f32 to vector<1x64xf32>
    %95 = arith.subf %94, %93 : vector<1x64xf32>
    %96 = arith.fptosi %88 : vector<1x64xf32> to vector<1x64xi32>
    %97 = arith.fptosi %89 : vector<1x64xf32> to vector<1x64xi32>
    %98 = vector.broadcast %96 : vector<1x64xi32> to vector<16x64xi32>
    %99 = arith.cmpi eq, %20, %98 : vector<16x64xi32>
    %100 = arith.extui %99 : vector<16x64xi1> to vector<16x64xi32>
    %101 = arith.sitofp %100 : vector<16x64xi32> to vector<16x64xf32>
    %102 = vector.broadcast %92 : vector<1x64xf32> to vector<16x64xf32>
    %103 = arith.mulf %102, %101 : vector<16x64xf32>
    %c1_i32_29 = arith.constant 1 : i32
    %104 = vector.broadcast %c1_i32_29 : i32 to vector<1x64xi32>
    %105 = arith.addi %96, %104 : vector<1x64xi32>
    %106 = vector.broadcast %105 : vector<1x64xi32> to vector<16x64xi32>
    %107 = arith.cmpi eq, %20, %106 : vector<16x64xi32>
    %108 = arith.extui %107 : vector<16x64xi1> to vector<16x64xi32>
    %109 = arith.sitofp %108 : vector<16x64xi32> to vector<16x64xf32>
    %110 = vector.broadcast %90 : vector<1x64xf32> to vector<16x64xf32>
    %111 = arith.mulf %110, %109 : vector<16x64xf32>
    %112 = arith.addf %103, %111 : vector<16x64xf32>
    %113 = vector.broadcast %97 : vector<1x64xi32> to vector<16x64xi32>
    %114 = arith.cmpi eq, %19, %113 : vector<16x64xi32>
    %115 = arith.extui %114 : vector<16x64xi1> to vector<16x64xi32>
    %116 = arith.sitofp %115 : vector<16x64xi32> to vector<16x64xf32>
    %117 = vector.broadcast %95 : vector<1x64xf32> to vector<16x64xf32>
    %118 = arith.mulf %117, %116 : vector<16x64xf32>
    %c1_i32_30 = arith.constant 1 : i32
    %119 = vector.broadcast %c1_i32_30 : i32 to vector<1x64xi32>
    %120 = arith.addi %97, %119 : vector<1x64xi32>
    %121 = vector.broadcast %120 : vector<1x64xi32> to vector<16x64xi32>
    %122 = arith.cmpi eq, %19, %121 : vector<16x64xi32>
    %123 = arith.extui %122 : vector<16x64xi1> to vector<16x64xi32>
    %124 = arith.sitofp %123 : vector<16x64xi32> to vector<16x64xf32>
    %125 = vector.broadcast %93 : vector<1x64xf32> to vector<16x64xf32>
    %126 = arith.mulf %125, %124 : vector<16x64xf32>
    %127 = arith.addf %118, %126 : vector<16x64xf32>
    %128 = vector.shape_cast %127 : vector<16x64xf32> to vector<16x1x64xf32>
    %129 = vector.shape_cast %112 : vector<16x64xf32> to vector<1x16x64xf32>
    %130 = vector.broadcast %128 : vector<16x1x64xf32> to vector<16x16x64xf32>
    %131 = vector.broadcast %129 : vector<1x16x64xf32> to vector<16x16x64xf32>
    %132 = arith.mulf %130, %131 : vector<16x16x64xf32>
    %133 = vector.shape_cast %132 : vector<16x16x64xf32> to vector<256x64xf32>
    %c0_31 = arith.constant 0 : index
    %c1 = arith.constant 1 : index
    %c0_32 = arith.constant 0 : index
    %c0_33 = arith.constant 0 : index
    %134 = vector.load %arg3[%c0_31, %c1, %c0_32, %c0_33] : memref<1x3x16x256xf32, #tpu.memory_space<vmem>>, vector<1x1x16x256xf32>
    %135 = vector.shape_cast %134 : vector<1x1x16x256xf32> to vector<16x256xf32>
    %cst_34 = arith.constant dense<0.000000e+00> : vector<16x64xf32>
    %136 = tpu.matmul %135, %133, %cst_34 {dimension_numbers = #tpu.dot_dimension_numbers<[1], [0], [0], [1], [0, 0, 1, 1], [], []>} : vector<16x256xf32>, vector<256x64xf32>, vector<16x64xf32> -> vector<16x64xf32>
    %137 = arith.addf %79, %136 : vector<16x64xf32>
    %cst_35 = arith.constant 1.000000e+00 : f32
    %138 = vector.broadcast %cst_35 : f32 to vector<1x64xf32>
    %139 = arith.addf %8, %138 : vector<1x64xf32>
    %cst_36 = arith.constant 7.500000e+00 : f32
    %140 = vector.broadcast %cst_36 : f32 to vector<1x64xf32>
    %141 = arith.mulf %139, %140 : vector<1x64xf32>
    %cst_37 = arith.constant 1.000000e+00 : f32
    %142 = vector.broadcast %cst_37 : f32 to vector<1x64xf32>
    %143 = arith.addf %13, %142 : vector<1x64xf32>
    %cst_38 = arith.constant 7.500000e+00 : f32
    %144 = vector.broadcast %cst_38 : f32 to vector<1x64xf32>
    %145 = arith.mulf %143, %144 : vector<1x64xf32>
    %146 = math.floor %141 : vector<1x64xf32>
    %147 = math.floor %145 : vector<1x64xf32>
    %148 = arith.subf %141, %146 : vector<1x64xf32>
    %cst_39 = arith.constant 1.000000e+00 : f32
    %149 = vector.broadcast %cst_39 : f32 to vector<1x64xf32>
    %150 = arith.subf %149, %148 : vector<1x64xf32>
    %151 = arith.subf %145, %147 : vector<1x64xf32>
    %cst_40 = arith.constant 1.000000e+00 : f32
    %152 = vector.broadcast %cst_40 : f32 to vector<1x64xf32>
    %153 = arith.subf %152, %151 : vector<1x64xf32>
    %154 = arith.fptosi %146 : vector<1x64xf32> to vector<1x64xi32>
    %155 = arith.fptosi %147 : vector<1x64xf32> to vector<1x64xi32>
    %156 = vector.broadcast %154 : vector<1x64xi32> to vector<16x64xi32>
    %157 = arith.cmpi eq, %20, %156 : vector<16x64xi32>
    %158 = arith.extui %157 : vector<16x64xi1> to vector<16x64xi32>
    %159 = arith.sitofp %158 : vector<16x64xi32> to vector<16x64xf32>
    %160 = vector.broadcast %150 : vector<1x64xf32> to vector<16x64xf32>
    %161 = arith.mulf %160, %159 : vector<16x64xf32>
    %c1_i32_41 = arith.constant 1 : i32
    %162 = vector.broadcast %c1_i32_41 : i32 to vector<1x64xi32>
    %163 = arith.addi %154, %162 : vector<1x64xi32>
    %164 = vector.broadcast %163 : vector<1x64xi32> to vector<16x64xi32>
    %165 = arith.cmpi eq, %20, %164 : vector<16x64xi32>
    %166 = arith.extui %165 : vector<16x64xi1> to vector<16x64xi32>
    %167 = arith.sitofp %166 : vector<16x64xi32> to vector<16x64xf32>
    %168 = vector.broadcast %148 : vector<1x64xf32> to vector<16x64xf32>
    %169 = arith.mulf %168, %167 : vector<16x64xf32>
    %170 = arith.addf %161, %169 : vector<16x64xf32>
    %171 = vector.broadcast %155 : vector<1x64xi32> to vector<16x64xi32>
    %172 = arith.cmpi eq, %19, %171 : vector<16x64xi32>
    %173 = arith.extui %172 : vector<16x64xi1> to vector<16x64xi32>
    %174 = arith.sitofp %173 : vector<16x64xi32> to vector<16x64xf32>
    %175 = vector.broadcast %153 : vector<1x64xf32> to vector<16x64xf32>
    %176 = arith.mulf %175, %174 : vector<16x64xf32>
    %c1_i32_42 = arith.constant 1 : i32
    %177 = vector.broadcast %c1_i32_42 : i32 to vector<1x64xi32>
    %178 = arith.addi %155, %177 : vector<1x64xi32>
    %179 = vector.broadcast %178 : vector<1x64xi32> to vector<16x64xi32>
    %180 = arith.cmpi eq, %19, %179 : vector<16x64xi32>
    %181 = arith.extui %180 : vector<16x64xi1> to vector<16x64xi32>
    %182 = arith.sitofp %181 : vector<16x64xi32> to vector<16x64xf32>
    %183 = vector.broadcast %151 : vector<1x64xf32> to vector<16x64xf32>
    %184 = arith.mulf %183, %182 : vector<16x64xf32>
    %185 = arith.addf %176, %184 : vector<16x64xf32>
    %186 = vector.shape_cast %185 : vector<16x64xf32> to vector<16x1x64xf32>
    %187 = vector.shape_cast %170 : vector<16x64xf32> to vector<1x16x64xf32>
    %188 = vector.broadcast %186 : vector<16x1x64xf32> to vector<16x16x64xf32>
    %189 = vector.broadcast %187 : vector<1x16x64xf32> to vector<16x16x64xf32>
    %190 = arith.mulf %188, %189 : vector<16x16x64xf32>
    %191 = vector.shape_cast %190 : vector<16x16x64xf32> to vector<256x64xf32>
    %c0_43 = arith.constant 0 : index
    %c2 = arith.constant 2 : index
    %c0_44 = arith.constant 0 : index
    %c0_45 = arith.constant 0 : index
    %192 = vector.load %arg3[%c0_43, %c2, %c0_44, %c0_45] : memref<1x3x16x256xf32, #tpu.memory_space<vmem>>, vector<1x1x16x256xf32>
    %193 = vector.shape_cast %192 : vector<1x1x16x256xf32> to vector<16x256xf32>
    %cst_46 = arith.constant dense<0.000000e+00> : vector<16x64xf32>
    %194 = tpu.matmul %193, %191, %cst_46 {dimension_numbers = #tpu.dot_dimension_numbers<[1], [0], [0], [1], [0, 0, 1, 1], [], []>} : vector<16x256xf32>, vector<256x64xf32>, vector<16x64xf32> -> vector<16x64xf32>
    %195 = arith.addf %137, %194 : vector<16x64xf32>
    %cst_47 = arith.constant 1.000000e+00 : f32
    %196 = vector.broadcast %cst_47 : f32 to vector<3x64xf32>
    %197 = arith.mulf %3, %196 : vector<3x64xf32>
    %198 = math.sin %197 : vector<3x64xf32>
    %cst_48 = arith.constant 1.000000e+00 : f32
    %199 = vector.broadcast %cst_48 : f32 to vector<3x64xf32>
    %200 = arith.mulf %3, %199 : vector<3x64xf32>
    %201 = math.cos %200 : vector<3x64xf32>
    %cst_49 = arith.constant 2.000000e+00 : f32
    %202 = vector.broadcast %cst_49 : f32 to vector<3x64xf32>
    %203 = arith.mulf %3, %202 : vector<3x64xf32>
    %204 = math.sin %203 : vector<3x64xf32>
    %cst_50 = arith.constant 2.000000e+00 : f32
    %205 = vector.broadcast %cst_50 : f32 to vector<3x64xf32>
    %206 = arith.mulf %3, %205 : vector<3x64xf32>
    %207 = math.cos %206 : vector<3x64xf32>
    %c0_51 = arith.constant 0 : index
    %c0_52 = arith.constant 0 : index
    %208 = vector.load %arg4[%c0_51, %c0_52] : memref<32x16xf32, #tpu.memory_space<vmem>>, vector<32x16xf32>
    %cst_53 = arith.constant dense<0.000000e+00> : vector<32x64xf32>
    %209 = tpu.matmul %208, %195, %cst_53 {dimension_numbers = #tpu.dot_dimension_numbers<[1], [0], [0], [1], [0, 0, 1, 1], [], []>} : vector<32x16xf32>, vector<16x64xf32>, vector<32x64xf32> -> vector<32x64xf32>
    %c0_54 = arith.constant 0 : index
    %c0_55 = arith.constant 0 : index
    %210 = vector.load %arg5[%c0_54, %c0_55] : memref<32x1xf32, #tpu.memory_space<vmem>>, vector<32x1xf32>
    %211 = vector.broadcast %210 : vector<32x1xf32> to vector<32x64xf32>
    %212 = arith.addf %209, %211 : vector<32x64xf32>
    %cst_56 = arith.constant 0.000000e+00 : f32
    %213 = vector.broadcast %cst_56 : f32 to vector<32x64xf32>
    %214 = arith.maximumf %212, %213 : vector<32x64xf32>
    %c0_57 = arith.constant 0 : index
    %c0_58 = arith.constant 0 : index
    %215 = vector.load %arg6[%c0_57, %c0_58] : memref<32x1xf32, #tpu.memory_space<vmem>>, vector<32x1xf32>
    %216 = vector.broadcast %215 : vector<32x1xf32> to vector<32x64xf32>
    %217 = arith.mulf %214, %216 : vector<32x64xf32>
    %cst_59 = arith.constant dense<0.000000e+00> : vector<64xf32>
    %218 = vector.multi_reduction <add>, %217, %cst_59 [0] : vector<32x64xf32> to vector<64xf32>
    %219 = vector.shape_cast %218 : vector<64xf32> to vector<1x64xf32>
    %c0_60 = arith.constant 0 : index
    %c0_61 = arith.constant 0 : index
    %220 = vector.load %arg7[%c0_60, %c0_61] : memref<1x1xf32, #tpu.memory_space<vmem>>, vector<1x1xf32>
    %221 = vector.broadcast %220 : vector<1x1xf32> to vector<1x64xf32>
    %222 = arith.addf %219, %221 : vector<1x64xf32>
    %223 = tpu.concatenate %195, %3, %198, %201, %204, %207 in 0 : vector<16x64xf32>, vector<3x64xf32>, vector<3x64xf32>, vector<3x64xf32>, vector<3x64xf32>, vector<3x64xf32> -> vector<31x64xf32>
    %c0_62 = arith.constant 0 : index
    %c0_63 = arith.constant 0 : index
    %224 = vector.load %arg8[%c0_62, %c0_63] : memref<32x31xf32, #tpu.memory_space<vmem>>, vector<32x31xf32>
    %cst_64 = arith.constant dense<0.000000e+00> : vector<32x64xf32>
    %225 = tpu.matmul %224, %223, %cst_64 {dimension_numbers = #tpu.dot_dimension_numbers<[1], [0], [0], [1], [0, 0, 1, 1], [], []>} : vector<32x31xf32>, vector<31x64xf32>, vector<32x64xf32> -> vector<32x64xf32>
    %c0_65 = arith.constant 0 : index
    %c0_66 = arith.constant 0 : index
    %226 = vector.load %arg9[%c0_65, %c0_66] : memref<32x1xf32, #tpu.memory_space<vmem>>, vector<32x1xf32>
    %227 = vector.broadcast %226 : vector<32x1xf32> to vector<32x64xf32>
    %228 = arith.addf %225, %227 : vector<32x64xf32>
    %cst_67 = arith.constant 0.000000e+00 : f32
    %229 = vector.broadcast %cst_67 : f32 to vector<32x64xf32>
    %230 = arith.maximumf %228, %229 : vector<32x64xf32>
    %c0_68 = arith.constant 0 : index
    %c0_69 = arith.constant 0 : index
    %231 = vector.load %arg10[%c0_68, %c0_69] : memref<3x32xf32, #tpu.memory_space<vmem>>, vector<3x32xf32>
    %cst_70 = arith.constant dense<0.000000e+00> : vector<3x64xf32>
    %232 = tpu.matmul %231, %230, %cst_70 {dimension_numbers = #tpu.dot_dimension_numbers<[1], [0], [0], [1], [0, 0, 1, 1], [], []>} : vector<3x32xf32>, vector<32x64xf32>, vector<3x64xf32> -> vector<3x64xf32>
    %c0_71 = arith.constant 0 : index
    %c0_72 = arith.constant 0 : index
    %233 = vector.load %arg11[%c0_71, %c0_72] : memref<3x1xf32, #tpu.memory_space<vmem>>, vector<3x1xf32>
    %234 = vector.broadcast %233 : vector<3x1xf32> to vector<3x64xf32>
    %235 = arith.addf %232, %234 : vector<3x64xf32>
    %236 = tpu.concatenate %222, %235 in 0 : vector<1x64xf32>, vector<3x64xf32> -> vector<4x64xf32>
    %c0_73 = arith.constant 0 : index
    %c0_74 = arith.constant 0 : index
    %c0_75 = arith.constant 0 : index
    %237 = vector.load %arg12[%c0_73, %c0_74, %c0_75] : memref<1x4x64xf32, #tpu.memory_space<vmem>>, vector<1x4x64xf32>
    %238 = vector.shape_cast %237 : vector<1x4x64xf32> to vector<4x64xf32>
    %239 = vector.shape_cast %236 : vector<4x64xf32> to vector<1x4x64xf32>
    tpu.vector_store %arg12[%c0_73, %c0_74, %c0_75], %239 {strides = array<i32>} : memref<1x4x64xf32, #tpu.memory_space<vmem>>, vector<1x4x64xf32>,
    return
  }
  func.func @transform_0(%arg0: i32) -> (i32, i32, i32) {
    %c0_i32 = arith.constant 0 : i32
    %c0_i32_0 = arith.constant 0 : i32
    %c0_i32_1 = arith.constant 0 : i32
    return %arg0, %c0_i32, %c0_i32_0 : i32, i32, i32
  }
  func.func @transform_1(%arg0: i32) -> (i32, i32, i32) {
    %c0_i32 = arith.constant 0 : i32
    %c0_i32_0 = arith.constant 0 : i32
    %c0_i32_1 = arith.constant 0 : i32
    return %arg0, %c0_i32, %c0_i32_0 : i32, i32, i32
  }
  func.func @transform_2(%arg0: i32) -> (i32, i32, i32, i32) {
    %c0_i32 = arith.constant 0 : i32
    %c0_i32_0 = arith.constant 0 : i32
    %c0_i32_1 = arith.constant 0 : i32
    %c0_i32_2 = arith.constant 0 : i32
    return %arg0, %c0_i32, %c0_i32_0, %c0_i32_1 : i32, i32, i32, i32
  }
  func.func @transform_3(%arg0: i32) -> (i32, i32) {
    %c0_i32 = arith.constant 0 : i32
    %c0_i32_0 = arith.constant 0 : i32
    %c0_i32_1 = arith.constant 0 : i32
    return %c0_i32, %c0_i32_0 : i32, i32
  }
  func.func @transform_4(%arg0: i32) -> (i32, i32) {
    %c0_i32 = arith.constant 0 : i32
    %c0_i32_0 = arith.constant 0 : i32
    %c0_i32_1 = arith.constant 0 : i32
    return %c0_i32, %c0_i32_0 : i32, i32
  }
  func.func @transform_5(%arg0: i32) -> (i32, i32) {
    %c0_i32 = arith.constant 0 : i32
    %c0_i32_0 = arith.constant 0 : i32
    %c0_i32_1 = arith.constant 0 : i32
    return %c0_i32, %c0_i32_0 : i32, i32
  }
  func.func @transform_6(%arg0: i32) -> (i32, i32) {
    %c0_i32 = arith.constant 0 : i32
    %c0_i32_0 = arith.constant 0 : i32
    %c0_i32_1 = arith.constant 0 : i32
    return %c0_i32, %c0_i32_0 : i32, i32
  }
  func.func @transform_7(%arg0: i32) -> (i32, i32) {
    %c0_i32 = arith.constant 0 : i32
    %c0_i32_0 = arith.constant 0 : i32
    %c0_i32_1 = arith.constant 0 : i32
    return %c0_i32, %c0_i32_0 : i32, i32
  }
  func.func @transform_8(%arg0: i32) -> (i32, i32) {
    %c0_i32 = arith.constant 0 : i32
    %c0_i32_0 = arith.constant 0 : i32
    %c0_i32_1 = arith.constant 0 : i32
    return %c0_i32, %c0_i32_0 : i32, i32
  }
  func.func @transform_9(%arg0: i32) -> (i32, i32) {
    %c0_i32 = arith.constant 0 : i32
    %c0_i32_0 = arith.constant 0 : i32
    %c0_i32_1 = arith.constant 0 : i32
    return %c0_i32, %c0_i32_0 : i32, i32
  }
  func.func @transform_10(%arg0: i32) -> (i32, i32) {
    %c0_i32 = arith.constant 0 : i32
    %c0_i32_0 = arith.constant 0 : i32
    %c0_i32_1 = arith.constant 0 : i32
    return %c0_i32, %c0_i32_0 : i32, i32
  }
  func.func @transform_11(%arg0: i32) -> (i32, i32, i32) {
    %c0_i32 = arith.constant 0 : i32
    %c0_i32_0 = arith.constant 0 : i32
    %c0_i32_1 = arith.constant 0 : i32
    return %arg0, %c0_i32, %c0_i32_0 : i32, i32, i32
  }
}

</mosaic_0001>

<bundles_post_ra>
// kernel: head_forward.1
= control target key start
LH: loop header
LB: loop body
LE: loop exit
PB: predicated region body
PF: predicated region fallthrough
CT: control target
= control target key end

     0   :  { %s2614_s19 = smov 0   ;;  %s3160_s0 = inlined_call_operand.vmem [shape: f32[2,3,64], index: 0, kind: input, shape index: {}]   ;;  %s3161_s1 = inlined_call_operand.vmem [shape: f32[2,3,64], index: 1, kind: input, shape index: {}]   ;;  %s3162_s2 = inlined_call_operand.vmem [shape: f32[2,3,16,256], index: 2, kind: input, shape index: {}]   ;;  %s3163_s3 = inlined_call_operand.vmem [shape: f32[32,16], index: 3, kind: input, shape index: {}]   ;;  %s3164_s4 = inlined_call_operand.vmem [shape: f32[32,1], index: 4, kind: input, shape index: {}]   ;;  %s3165_s5 = inlined_call_operand.vmem [shape: f32[32,1], index: 5, kind: input, shape index: {}]   ;;  %s3166_s6 = inlined_call_operand.<no memory space> [shape: f32[1,1], index: 6, kind: input, shape index: {}]   ;;  %s3167_s7 = inlined_call_operand.vmem [shape: f32[32,31], index: 7, kind: input, shape index: {}]   ;;  %s3168_s8 = inlined_call_operand.vmem [shape: f32[32,1], index: 8, kind: input, shape index: {}]   ;;  %s3169_s9 = inlined_call_operand.vmem [shape: f32[3,32], index: 9, kind: input, shape index: {}]   ;;  %s3170_s10 = inlined_call_operand.vmem [shape: f32[3,1], index: 10, kind: input, shape index: {}]   ;;  %s3171_s11 = inlined_call_operand.vmem [shape: f32[2,4,64], index: 11, kind: output, shape index: {}]  }
   0x1   :  { %v16_v0 = vstv %s3166_s6 }
   0x2   :  { %17 = vst [vmem:[#allocation2] sm:$0x1] %v16_v0 }
   0x3 LB: > { %s2149_s20 = sadd.s32 4294967295, %s2537_s19   ;;  %p2153_p0 = scmp.ge.s32.totalorder %s2537_s19, 1  ;;  %s2537_s19 = sphi %s2614_s19, %s23_s19  }
   0x4   : > { %p357_p1 = scmp.lt.s32.totalorder %s2537_s19, 3 }
   0x6   : > { %p358_p2 = pnand %p2153_p0, %p357_p1 }
   0x7   : > { %p404_p3 = scmp.lt.s32.totalorder (!%p358_p2), %s2149_s20, 1  ;;  %v424_v3 = vlaneseq (!%p358_p2)  ;;  %v2539_v7 = vmov (!%p358_p2), 1966171168   ;;  %v2540_v33 = vmov (!%p358_p2), 0.0  }
   0x8   : > { %361 = sbr.rel (%p358_p2) target bundleno = 802 (0x322), region = 64  ;;  %v506_v8 = vunpack.c.l.s4 (!%p358_p2), %v2539_v7 }
   0x9   : > { %v2635_v9 = vshrl.u32 (!%p358_p2), %v424_v3, 7 }
   0xa   : > { %v507_v12 = vunpack.c.0.s8 (!%p358_p2), %v506_v8 }
   0xb   : > { %v435_v15 = vsub.s32 (!%p358_p2), 1, %v2635_v9  ;;  %v470_v16 = vsub.s32 (!%p358_p2), 2, %v2635_v9  ;;  %v2640_v17 = vsub.s32 (!%p358_p2), 0, %v2635_v9  ;;  %v426_v18 = vadd.s32 (!%p358_p2), 8, %v2635_v9 }
   0xc   : > { %v2644_v23 = vsub.s32 (!%p358_p2), %v507_v12, %v2635_v9 }
   0xf   : > { %s3177_s20 = smov (!%p404_p3, %s2149_s20), 1 }
  0x10   : > { %s2622_s21 = sshll.u32 %s3177_s20, 2  ;;  %s2490_s6 = smul.u32 96, %s3177_s20 }
  0x11   : > { %s407_s24 = scalar_lea.vmem %s3160_s0, %s2622_s21  ;;  %s411_s30 = scalar_lea.vmem %s3161_s1, %s2622_s21 }
  0x12   : > { %v421_v1 = vld [vmem:[%s407_s24] sm:$0x7]  ;;  %s2631_s27 = scalar_lea.vmem %s3162_s2, %s2490_s6  ;;  %s420_s23 = scalar_lea.vmem %s3171_s11, %s2622_s21 }
  0x13   : > { %v423_v2 = vmul.f32 0.6666667, %v421_v1  ;;  %v2171_v4 = vld [vmem:[%s2631_s27 + $0x28] sm:$0xff] }
  0x14   : > { %v715_v5 = vld [vmem:[%s2631_s27 + $0x8] sm:$0xff]  ;;  %853 = vmatprep.mubr.f32.mxu0 %v2171_v4 }
  0x15   : > { %928 = vmatprep.mubr.f32.mxu1 %v715_v5  ;;  %v427_v6 = vadd.f32 1.0, %v423_v2 }
  0x17   : > { %v428_v10 = vmul.f32 7.5, %v427_v6 }
  0x19   : > { %v429_v11 = vfloor.f32 %v428_v10 }
  0x1b   : > { %v430_v13 = vsub.f32 %v428_v10, %v429_v11  ;;  %v2491_v14 = vtrunc.f32 %v429_v11 }
  0x1d   : > { %v431_v19 = vsub.f32 1.0, %v430_v13  ;;  %v2492_v20 = vcvt.f32.s32 %v2491_v14  ;;  %v463_v21 = vrot.slane %v430_v13, %v435_v15  ;;  %v497_v22 = vrot.slane %v430_v13, %v470_v16 }
  0x1e   : > { %v747_v31 = vrot.slane %v430_v13, %v2640_v17 }
  0x1f   : > { %v436_v24 = vrot.slane %v2492_v20, %v435_v15  ;;  %v446_v25 = vrot.slane %v431_v19, %v435_v15  ;;  %v449_v26 = vadd.s32 1, %v2492_v20  ;;  %v471_v27 = vrot.slane %v2492_v20, %v470_v16 }
  0x20   : > { %v481_v28 = vrot.slane %v431_v19, %v470_v16  ;;  %v721_v29 = vrot.slane %v2492_v20, %v2640_v17  ;;  %v731_v30 = vrot.slane %v431_v19, %v2640_v17 }
  0x21   : > { %vm437_vm0 = vcmp.eq.s32.totalorder %v2635_v9, %v436_v24  ;;  %vm438_vm1 = vcmp.eq.s32.totalorder %v426_v18, %v436_v24  ;;  %v453_v32 = vrot.slane %v449_v26, %v435_v15  ;;  %vm473_vm2 = vcmp.eq.s32.totalorder %v426_v18, %v471_v27 }
  0x22   : > { %v2158_v34 = vsel %vm437_vm0, 1.0, %v2540_v33  ;;  %v2159_v35 = vsel %vm438_vm1, 1.0, %v2540_v33  ;;  %v2163_v36 = vsel %vm473_vm2, 1.0, %v2540_v33  ;;  %v487_v37 = vrot.slane %v449_v26, %v470_v16 }
  0x23   : > { %v447_v38 = vmul.f32 %v2158_v34, %v446_v25  ;;  %v448_v39 = vmul.f32 %v2159_v35, %v446_v25  ;;  %vm454_vm3 = vcmp.eq.s32.totalorder %v2635_v9, %v453_v32  ;;  %vm455_vm4 = vcmp.eq.s32.totalorder %v426_v18, %v453_v32 }
  0x24   : > { %v2160_v40 = vsel %vm454_vm3, 1.0, %v2540_v33  ;;  %v2161_v41 = vsel %vm455_vm4, 1.0, %v2540_v33  ;;  %v483_v42 = vmul.f32 %v2163_v36, %v481_v28  ;;  %vm489_vm5 = vcmp.eq.s32.totalorder %v426_v18, %v487_v37 }
  0x25   : > { %v464_v43 = vmul.f32 %v2160_v40, %v463_v21  ;;  %v465_v44 = vmul.f32 %v2161_v41, %v463_v21  ;;  %v2165_v45 = vsel %vm489_vm5, 1.0, %v2540_v33  ;;  %vm722_vm6 = vcmp.eq.s32.totalorder %v2635_v9, %v721_v29 }
  0x26   : > { %v499_v46 = vmul.f32 %v2165_v45, %v497_v22  ;;  %vm723_vm7 = vcmp.eq.s32.totalorder %v426_v18, %v721_v29  ;;  %v2166_v47 = vsel %vm722_vm6, 1.0, %v2540_v33  ;;  %v737_v48 = vrot.slane %v449_v26, %v2640_v17 }
  0x27   : > { %v2660_v49 = vadd.f32 %v464_v43, %v447_v38  ;;  %v2662_v50 = vadd.f32 %v465_v44, %v448_v39  ;;  %v2167_v51 = vsel %vm723_vm7, 1.0, %v2540_v33  ;;  %v732_v52 = vmul.f32 %v2166_v47, %v731_v30 }
  0x28   : > { %v501_v53 = vadd.f32 %v499_v46, %v483_v42  ;;  %v733_v54 = vmul.f32 %v2167_v51, %v731_v30  ;;  %vm738_vm8 = vcmp.eq.s32.totalorder %v2635_v9, %v737_v48  ;;  %vm739_vm9 = vcmp.eq.s32.totalorder %v426_v18, %v737_v48 }
  0x29   : > { %v2168_v55 = vsel %vm738_vm8, 1.0, %v2540_v33  ;;  %v2169_v56 = vsel %vm739_vm9, 1.0, %v2540_v33  ;;  %vm472_vm10 = vcmp.eq.s32.totalorder %v2635_v9, %v471_v27  ;;  %vm488_vm11 = vcmp.eq.s32.totalorder %v2635_v9, %v487_v37 }
  0x2a   : > { %v553_v57 = vcombine.high %v501_v53, %v501_v53  ;;  %v560_v58 = vrot.slane %v501_v53, %v2644_v23  ;;  %v748_v59 = vmul.f32 %v2168_v55, %v747_v31  ;;  %v749_v60 = vmul.f32 %v2169_v56, %v747_v31 }
  0x2b   : > { %v2162_v61 = vsel %vm472_vm10, 1.0, %v2540_v33  ;;  %v2164_v62 = vsel %vm488_vm11, 1.0, %v2540_v33  ;;  %v2675_v63 = vrot.slane %v2662_v50, %v2644_v23  ;;  %v2679_v0 = vrot.slane %v2660_v49, %v2644_v23 }
  0x2c   : > { %v568_v1 = vcombine.high %v560_v58, %v560_v58  ;;  %v576_v2 = vrot.slane %v560_v58, %v2644_v23  ;;  %v2682_v3 = vadd.f32 %v748_v59, %v732_v52  ;;  %v2684_v4 = vadd.f32 %v749_v60, %v733_v54 }
  0x2d   : > { %v482_v5 = vmul.f32 %v2162_v61, %v481_v28  ;;  %v498_v6 = vmul.f32 %v2164_v62, %v497_v22  ;;  %v2687_v7 = vrot.slane %v553_v57, %v2644_v23  ;;  %v2693_v11 = vrot.slane %v2675_v63, %v2644_v23 }
  0x2e   : > { %v598_v8 = vcombine.high %v576_v2, %v576_v2  ;;  %v637_v9 = vrot.slane %v576_v2, %v2640_v17  ;;  %v590_v10 = vrot.slane %v568_v1, %v2644_v23  ;;  %v2705_v15 = vrot.slane %v2679_v0, %v2644_v23 }
  0x2f   : > { %v2695_v12 = vadd.f32 %v498_v6, %v482_v5  ;;  %v2699_v13 = vrot.slane %v2687_v7, %v2644_v23  ;;  %v569_v14 = vcombine.high %v2687_v7, %v2687_v7  ;;  %vm1676_vm6 = vcmask 130048  }
  0x30   : > { %v768_v16 = vmul.f32 %v2682_v3, %v637_v9  ;;  %v769_v18 = vmul.f32 %v2684_v4, %v637_v9  ;;  %v698_v19 = vmul.f32 %v637_v9, %v2660_v49  ;;  %v699_v20 = vmul.f32 %v637_v9, %v2662_v50 }
  0x31   : > { %v504_v21 = vcombine.high %v2695_v12, %v2695_v12  ;;  %v511_v22 = vrot.slane %v2695_v12, %v2644_v23  ;;  %v641_v24 = vrot.slane %v590_v10, %v2640_v17  ;;  %v645_v25 = vrot.slane %v598_v8, %v2640_v17 }
  0x32   : > { %v2374_v26 = vpack.c.bf16 %v769_v18, %v768_v16  ;;  %v2406_v27 = vpack.c.bf16 %v699_v20, %v698_v19  ;;  %v600_v28 = vcombine.high %v590_v10, %v590_v10  ;;  %v2719_v29 = vrot.slane %v2699_v13, %v2640_v17 }
  0x33   : > { %v519_v30 = vcombine.high %v511_v22, %v511_v22  ;;  %v527_v31 = vrot.slane %v511_v22, %v2644_v23  ;;  %v770_v32 = vmul.f32 %v2682_v3, %v641_v24  ;;  %v771_v34 = vmul.f32 %v2684_v4, %v641_v24 }
  0x34   : > { %2375 = vmatprep.subr.bf16.mxu0 %v2374_v26  ;;  %2407 = vmatprep.subr.bf16.mxu1 %v2406_v27  ;;  %v700_v35 = vmul.f32 %v641_v24, %v2660_v49  ;;  %v701_v36 = vmul.f32 %v641_v24, %v2662_v50  ;;  %v772_v37 = vmul.f32 %v2682_v3, %v645_v25 }
  0x35   : > { %v549_v38 = vcombine.high %v527_v31, %v527_v31  ;;  %v605_v39 = vrot.slane %v527_v31, %v2640_v17  ;;  %v2378_v40 = vpack.c.bf16 %v771_v34, %v770_v32  ;;  %v541_v41 = vrot.slane %v519_v30, %v2644_v23 }
  0x36   : > { %v2410_v42 = vpack.c.bf16 %v701_v36, %v700_v35  ;;  %v773_v43 = vmul.f32 %v2684_v4, %v645_v25  ;;  %v702_v44 = vmul.f32 %v645_v25, %v2660_v49  ;;  %v703_v45 = vmul.f32 %v645_v25, %v2662_v50 }
  0x37   : > { %v752_v46 = vmul.f32 %v2682_v3, %v605_v39  ;;  %v753_v47 = vmul.f32 %v2684_v4, %v605_v39  ;;  %v682_v48 = vmul.f32 %v605_v39, %v2660_v49  ;;  %v683_v51 = vmul.f32 %v605_v39, %v2662_v50 }
  0x38   : > { %v609_v52 = vrot.slane %v541_v41, %v2640_v17  ;;  %v2382_v53 = vpack.c.bf16 %v773_v43, %v772_v37  ;;  %v2414_v54 = vpack.c.bf16 %v703_v45, %v702_v44  ;;  %v613_v55 = vrot.slane %v549_v38, %v2640_v17 }
  0x39   : > { %v2376_v56 = vpack.c.bf16 %v753_v47, %v752_v46  ;;  %v2408_v57 = vpack.c.bf16 %v683_v51, %v682_v48  ;;  %v649_v58 = vrot.slane %v600_v28, %v2640_v17  ;;  %v551_v59 = vcombine.high %v541_v41, %v541_v41 }
  0x3a   : > { %v754_v60 = vmul.f32 %v2682_v3, %v609_v52  ;;  %v755_v61 = vmul.f32 %v2684_v4, %v609_v52  ;;  %v684_v62 = vmul.f32 %v609_v52, %v2660_v49  ;;  %v685_v1 = vmul.f32 %v609_v52, %v2662_v50 }
  0x3b   : > { %2377 = vmatpush3.bf16.msra.mxu0 %v2376_v56  ;;  %2409 = vmatpush3.bf16.msra.mxu1 %v2408_v57  ;;  %v756_v2 = vmul.f32 %v2682_v3, %v613_v55  ;;  %v757_v5 = vmul.f32 %v2684_v4, %v613_v55  ;;  %v686_v6 = vmul.f32 %v613_v55, %v2660_v49 }
  0x3c   : > { %2379 = vmatprep.subr.bf16.mxu0 %v2378_v40  ;;  %2411 = vmatprep.subr.bf16.mxu1 %v2410_v42  ;;  %v2380_v8 = vpack.c.bf16 %v755_v61, %v754_v60  ;;  %v2412_v9 = vpack.c.bf16 %v685_v1, %v684_v62  ;;  %v687_v10 = vmul.f32 %v613_v55, %v2662_v50 }
  0x3d   : > { %v2384_v16 = vpack.c.bf16 %v757_v5, %v756_v2  ;;  %v774_v18 = vmul.f32 %v2682_v3, %v649_v58  ;;  %v775_v19 = vmul.f32 %v2684_v4, %v649_v58  ;;  %v704_v20 = vmul.f32 %v649_v58, %v2660_v49 }
  0x3e   : > { %v2416_v22 = vpack.c.bf16 %v687_v10, %v686_v6  ;;  %v705_v24 = vmul.f32 %v649_v58, %v2662_v50  ;;  %v617_v25 = vrot.slane %v551_v59, %v2640_v17  ;;  %v776_v26 = vmul.f32 %v2682_v3, %v2719_v29 }
  0x3f   : > { %2381 = vmatpush3.bf16.msra.mxu0 %v2380_v8  ;;  %2413 = vmatpush3.bf16.msra.mxu1 %v2412_v9  ;;  %v2386_v27 = vpack.c.bf16 %v775_v19, %v774_v18  ;;  %v777_v28 = vmul.f32 %v2684_v4, %v2719_v29  ;;  %v706_v30 = vmul.f32 %v2719_v29, %v2660_v49 }
  0x40   : > { %2383 = vmatprep.subr.bf16.mxu0 %v2382_v53  ;;  %2415 = vmatprep.subr.bf16.mxu1 %v2414_v54  ;;  %v2418_v31 = vpack.c.bf16 %v705_v24, %v704_v20  ;;  %v758_v32 = vmul.f32 %v2682_v3, %v617_v25  ;;  %v759_v34 = vmul.f32 %v2684_v4, %v617_v25 }
  0x41   : > { %v688_v35 = vmul.f32 %v617_v25, %v2660_v49  ;;  %v689_v36 = vmul.f32 %v617_v25, %v2662_v50  ;;  %v707_v37 = vmul.f32 %v2719_v29, %v2662_v50  ;;  %v1074_v38 = vrot.slane %v2693_v11, %v2640_v17 }
  0x42   : > { %v2390_v39 = vpack.c.bf16 %v777_v28, %v776_v26  ;;  %v518_v40 = vrot.slane %v504_v21, %v2644_v23  ;;  %v597_v41 = vrot.slane %v569_v14, %v2644_v23  ;;  %v599_v42 = vcombine.high %v2699_v13, %v2699_v13 }
  0x43   : > { %2385 = vmatpush3.bf16.msra.mxu0 %v2384_v16  ;;  %2417 = vmatpush3.bf16.msra.mxu1 %v2416_v22  ;;  %v2388_v29 = vpack.c.bf16 %v759_v34, %v758_v32  ;;  %v2420_v43 = vpack.c.bf16 %v689_v36, %v688_v35  ;;  %v2422_v44 = vpack.c.bf16 %v707_v37, %v706_v30 }
  0x44   : > { %2387 = vmatprep.subr.bf16.mxu0 %v2386_v27  ;;  %2419 = vmatprep.subr.bf16.mxu1 %v2418_v31  ;;  %v534_v45 = vrot.slane %v518_v40, %v2644_v23  ;;  %v657_v12 = vrot.slane %v597_v41, %v2640_v17  ;;  %v520_v21 = vcombine.high %v518_v40, %v518_v40 }
  0x45   : > { %v661_v46 = vrot.slane %v599_v42, %v2640_v17  ;;  %v601_v47 = vcombine.high %v597_v41, %v597_v41  ;;  %v2780_v7 = vmul.f32 %v1074_v38, %v2682_v3  ;;  %v1042_v13 = vrot.slane %v2705_v15, %v2640_v17 }
  0x46   : > { %v621_v14 = vrot.slane %v534_v45, %v2640_v17  ;;  %v778_v48 = vmul.f32 %v2682_v3, %v657_v12  ;;  %v779_v51 = vmul.f32 %v2684_v4, %v657_v12  ;;  %v708_v52 = vmul.f32 %v657_v12, %v2660_v49 }
  0x47   : > { %2389 = vmatpush3.bf16.msra.mxu0 %v2388_v29  ;;  %2421 = vmatpush3.bf16.msra.mxu1 %v2420_v43  ;;  %v709_v53 = vmul.f32 %v657_v12, %v2662_v50  ;;  %v548_v54 = vrot.slane %v520_v21, %v2644_v23  ;;  %v780_v55 = vmul.f32 %v2682_v3, %v661_v46 }
  0x48   : > { %2391 = vmatprep.subr.bf16.mxu0 %v2390_v39  ;;  %2423 = vmatprep.subr.bf16.mxu1 %v2422_v44  ;;  %v760_v56 = vmul.f32 %v2682_v3, %v621_v14  ;;  %v761_v57 = vmul.f32 %v2684_v4, %v621_v14  ;;  %v690_v58 = vmul.f32 %v621_v14, %v2660_v49 }
  0x49   : > { %v691_v59 = vmul.f32 %v621_v14, %v2662_v50  ;;  %v2394_v60 = vpack.c.bf16 %v779_v51, %v778_v48  ;;  %v2426_v61 = vpack.c.bf16 %v709_v53, %v708_v52  ;;  %v625_v62 = vrot.slane %v548_v54, %v2640_v17 }
  0x4a   : > { %v2392_v1 = vpack.c.bf16 %v761_v57, %v760_v56  ;;  %v781_v2 = vmul.f32 %v2684_v4, %v661_v46  ;;  %v710_v5 = vmul.f32 %v661_v46, %v2660_v49  ;;  %v711_v6 = vmul.f32 %v661_v46, %v2662_v50 }
  0x4b   : > { %v2424_v8 = vpack.c.bf16 %v691_v59, %v690_v58  ;;  %v762_v9 = vmul.f32 %v2682_v3, %v625_v62  ;;  %v763_v10 = vmul.f32 %v2684_v4, %v625_v62  ;;  %v692_v16 = vmul.f32 %v625_v62, %v2660_v49 }
  0x4c   : > { %2393 = vmatpush3.bf16.msra.mxu0 %v2392_v1  ;;  %v693_v18 = vmul.f32 %v625_v62, %v2662_v50  ;;  %v2398_v19 = vpack.c.bf16 %v781_v2, %v780_v55  ;;  %v550_v20 = vcombine.high %v534_v45, %v534_v45  ;;  %v1136_v22 = vmul.f32 %v1074_v38, %v2684_v4  ;;  %v714_v2 = vld [vmem:[%s2631_s27] sm:$0xff] }
  0x4d   : > { %2425 = vmatpush3.bf16.msra.mxu1 %v2424_v8  ;;  %2395 = vmatprep.subr.bf16.mxu0 %v2394_v60  ;;  %v2396_v24 = vpack.c.bf16 %v763_v10, %v762_v9  ;;  %v665_v25 = vrot.slane %v601_v47, %v2640_v17  ;;  %v552_v26 = vcombine.high %v548_v54, %v548_v54 }
  0x4e   : > { %2427 = vmatprep.subr.bf16.mxu1 %v2426_v61  ;;  %v2428_v27 = vpack.c.bf16 %v693_v18, %v692_v16  ;;  %v2430_v28 = vpack.c.bf16 %v711_v6, %v710_v5  ;;  %v629_v30 = vrot.slane %v550_v20, %v2640_v17  ;;  %v2807_v31 = vmul.f32 %v1042_v13, %v2682_v3  ;;  %v2173_v20 = vld [vmem:[%s2631_s27 + $0x38] sm:$0xff] }
  0x4f   : > { %v782_v32 = vmul.f32 %v2682_v3, %v665_v25  ;;  %v783_v34 = vmul.f32 %v2684_v4, %v665_v25  ;;  %v712_v35 = vmul.f32 %v665_v25, %v2660_v49  ;;  %v713_v36 = vmul.f32 %v665_v25, %v2662_v50 }
  0x50   : > { %2397 = vmatpush3.bf16.msra.mxu0 %v2396_v24  ;;  %v764_v37 = vmul.f32 %v2682_v3, %v629_v30  ;;  %v765_v38 = vmul.f32 %v2684_v4, %v629_v30  ;;  %v694_v39 = vmul.f32 %v629_v30, %v2660_v49  ;;  %v695_v40 = vmul.f32 %v629_v30, %v2662_v50 }
  0x51   : > { %2429 = vmatpush3.bf16.msra.mxu1 %v2428_v27  ;;  %2399 = vmatprep.subr.bf16.mxu0 %v2398_v19  ;;  %v2402_v41 = vpack.c.bf16 %v783_v34, %v782_v32  ;;  %v2434_v42 = vpack.c.bf16 %v713_v36, %v712_v35  ;;  %v633_v29 = vrot.slane %v552_v26, %v2640_v17  ;;  %v2172_v27 = vld [vmem:[%s2631_s27 + $0x30] sm:$0xff] }
  0x52   : > { %2431 = vmatprep.subr.bf16.mxu1 %v2430_v28  ;;  %v2400_v43 = vpack.c.bf16 %v765_v38, %v764_v37  ;;  %v2432_v44 = vpack.c.bf16 %v695_v40, %v694_v39  ;;  %v1120_v45 = vmul.f32 %v1042_v13, %v2684_v4  ;;  %v1005_v12 = vcombine.high %v2675_v63, %v2675_v63  ;;  %v716_v34 = vld [vmem:[%s2631_s27 + $0x10] sm:$0xff]  ;;  %v2175_v40 = vld [vmem:[%s2631_s27 + $0x48] sm:$0xff] }
  0x53   : > { %v766_v21 = vmul.f32 %v2682_v3, %v633_v29  ;;  %v767_v46 = vmul.f32 %v2684_v4, %v633_v29  ;;  %v696_v47 = vmul.f32 %v633_v29, %v2660_v49  ;;  %v697_v14 = vmul.f32 %v633_v29, %v2662_v50 }
  0x54   : > { %2401 = vmatpush3.bf16.msra.mxu0 %v2400_v43  ;;  %v2438_v48 = vpack.c.bf16 %v1136_v22, %v2780_v7  ;;  %v1027_v51 = vrot.slane %v1005_v12, %v2644_v23  ;;  %v956_v52 = vcombine.high %v2679_v0, %v2679_v0  ;;  %v1035_v13 = vcombine.high %v2693_v11, %v2693_v11  ;;  %v717_v22 = vld [vmem:[%s2631_s27 + $0x18] sm:$0xff] }
  0x55   : > { %2433 = vmatpush3.bf16.msra.mxu1 %v2432_v44  ;;  %2403 = vmatprep.subr.bf16.mxu0 %v2402_v41  ;;  %v2404_v63 = vpack.c.bf16 %v767_v46, %v766_v21  ;;  %v2436_v53 = vpack.c.bf16 %v697_v14, %v696_v47  ;;  %v986_v54 = vcombine.high %v2705_v15, %v2705_v15  ;;  %v2170_v15 = vld [vmem:[%s2631_s27 + $0x20] sm:$0xff] }
  0x56   : > { %2435 = vmatprep.subr.bf16.mxu1 %v2434_v42  ;;  %v1078_v7 = vrot.slane %v1027_v51, %v2640_v17  ;;  %v978_v55 = vrot.slane %v956_v52, %v2644_v23  ;;  %v1082_v56 = vrot.slane %v1035_v13, %v2640_v17  ;;  %v1037_v0 = vcombine.high %v1027_v51, %v1027_v51 }
  0x57   : > { %v2440_v57 = vpack.c.bf16 %v1120_v45, %v2807_v31  ;;  %v1050_v11 = vrot.slane %v986_v54, %v2640_v17  ;;  %v990_v58 = vcombine.high %v2662_v50, %v2662_v50  ;;  %v941_v59 = vcombine.high %v2660_v49, %v2660_v49 }
  0x58   : > { %2405 = vmatpush3.bf16.msra.mxu0 %v2404_v63  ;;  %v1137_v60 = vmul.f32 %v1078_v7, %v2682_v3  ;;  %v1138_v61 = vmul.f32 %v1078_v7, %v2684_v4  ;;  %v1046_v62 = vrot.slane %v978_v55, %v2640_v17  ;;  %v1139_v1 = vmul.f32 %v1082_v56, %v2682_v3 }
  0x59   : > { %2437 = vmatpush3.bf16.msra.mxu1 %v2436_v53  ;;  %2439 = vmatprep.subr.bf16.mxu0 %v2438_v48  ;;  %v1140_v50 = vmul.f32 %v1082_v56, %v2684_v4  ;;  %v1123_v5 = vmul.f32 %v1050_v11, %v2682_v3  ;;  %v1124_v49 = vmul.f32 %v1050_v11, %v2684_v4 }
  0x5a   : > { %v2442_v6 = vpack.c.bf16 %v1138_v61, %v1137_v60  ;;  %v1121_v8 = vmul.f32 %v1046_v62, %v2682_v3  ;;  %v1122_v9 = vmul.f32 %v1046_v62, %v2684_v4  ;;  %v1086_v10 = vrot.slane %v1037_v0, %v2640_v17 }
  0x5b   : > { %854 = vmatmul.mubr.f32.vlgmr.msra.gmra.mrb[0].mxu0 %v2170_v15  ;;  %v2446_v16 = vpack.c.bf16 %v1140_v50, %v1139_v1  ;;  %v988_v18 = vcombine.high %v978_v55, %v978_v55  ;;  %v1004_v19 = vrot.slane %v990_v58, %v2644_v23  ;;  %v955_v31 = vrot.slane %v941_v59, %v2644_v23 }
  0x5c   : > { %929 = vmatmul.mubr.f32.vlgmr.msra.gmra.mrb[0].mxu1 %v714_v2  ;;  %2441 = vmatpush3.bf16.msra.mxu0 %v2440_v57  ;;  %v2444_v24 = vpack.c.bf16 %v1122_v9, %v1121_v8  ;;  %v1141_v25 = vmul.f32 %v1086_v10, %v2682_v3  ;;  %v1142_v26 = vmul.f32 %v1086_v10, %v2684_v4 }
  0x5d   : > { %2443 = vmatprep.subr.bf16.mxu0 %v2442_v6  ;;  %v1054_v28 = vrot.slane %v988_v18, %v2640_v17  ;;  %v1020_v30 = vrot.slane %v1004_v19, %v2644_v23  ;;  %v1006_v32 = vcombine.high %v1004_v19, %v1004_v19  ;;  %v2448_v35 = vpack.c.bf16 %v1124_v49, %v1123_v5  ;;  %v2177_v18 = vld [vmem:[%s2631_s27 + $0x58] sm:$0xff]  ;;  %v2176_v19 = vld [vmem:[%s2631_s27 + $0x50] sm:$0xff] }
  0x5e   : > { %858 = vmatprep.mubr.f32.mxu0 %v2173_v20  ;;  %933 = vmatprep.mubr.f32.mxu1 %v717_v22  ;;  %v971_v39 = vrot.slane %v955_v31, %v2644_v23  ;;  %v957_v42 = vcombine.high %v955_v31, %v955_v31  ;;  %v2450_v43 = vpack.c.bf16 %v1142_v26, %v1141_v25 }
  0x5f   : > { %v1125_v36 = vmul.f32 %v1054_v28, %v2682_v3  ;;  %v1126_v37 = vmul.f32 %v1054_v28, %v2684_v4  ;;  %v1090_v38 = vrot.slane %v1020_v30, %v2640_v17  ;;  %859 = vmatmul.mubr.f32.gmra.mrb[2].mxu0 %v2172_v27  ;;  %v1034_v41 = vrot.slane %v1006_v32, %v2644_v23 }
  0x60   : > { %2445 = vmatpush3.bf16.msra.mxu0 %v2444_v24  ;;  %v1036_v29 = vcombine.high %v1020_v30, %v1020_v30  ;;  %934 = vmatmul.mubr.f32.gmra.mrb[2].mxu1 %v716_v34  ;;  %v1058_v12 = vrot.slane %v971_v39, %v2640_v17  ;;  %v985_v46 = vrot.slane %v957_v42, %v2644_v23 }
  0x61   : > { %2447 = vmatprep.subr.bf16.mxu0 %v2446_v16  ;;  %v1143_v44 = vmul.f32 %v1090_v38, %v2682_v3  ;;  %v1144_v45 = vmul.f32 %v1090_v38, %v2684_v4  ;;  %v1094_v21 = vrot.slane %v1034_v41, %v2640_v17  ;;  %v987_v47 = vcombine.high %v971_v39, %v971_v39  ;;  %v2174_v16 = vld [vmem:[%s2631_s27 + $0x40] sm:$0xff] }
  0x62   : > { %1220 = vmatprep.mubr.f32.mxu0 %v2175_v40  ;;  %v1127_v14 = vmul.f32 %v1058_v12, %v2682_v3  ;;  %v1128_v48 = vmul.f32 %v1058_v12, %v2684_v4  ;;  %v1038_v51 = vcombine.high %v1034_v41, %v1034_v41  ;;  %v2452_v52 = vpack.c.bf16 %v1126_v37, %v1125_v36 }
  0x63   : > { %v2454_v13 = vpack.c.bf16 %v1144_v45, %v1143_v44  ;;  %v1062_v63 = vrot.slane %v985_v46, %v2640_v17  ;;  %v1098_v53 = vrot.slane %v1036_v29, %v2640_v17  ;;  %v1145_v54 = vmul.f32 %v1094_v21, %v2682_v3 }
  0x64   : > { %2449 = vmatpush3.bf16.msra.mxu0 %v2448_v35  ;;  %v1146_v7 = vmul.f32 %v1094_v21, %v2684_v4  ;;  %v1066_v23 = vrot.slane %v987_v47, %v2640_v17  ;;  %v1102_v55 = vrot.slane %v1038_v51, %v2640_v17  ;;  %v989_v56 = vcombine.high %v985_v46, %v985_v46 }
  0x65   : > { %2451 = vmatprep.subr.bf16.mxu0 %v2450_v43  ;;  %v2456_v0 = vpack.c.bf16 %v1128_v48, %v1127_v14  ;;  %v1129_v59 = vmul.f32 %v1062_v63, %v2682_v3  ;;  %v1130_v15 = vmul.f32 %v1062_v63, %v2684_v4  ;;  %v1147_v1 = vmul.f32 %v1098_v53, %v2682_v3 }
  0x66   : > { %v1131_v57 = vmul.f32 %v1066_v23, %v2682_v3  ;;  %v1132_v11 = vmul.f32 %v1066_v23, %v2684_v4  ;;  %v1149_v58 = vmul.f32 %v1102_v55, %v2682_v3  ;;  %v1150_v60 = vmul.f32 %v1102_v55, %v2684_v4 }
  0x67   : > { %v1070_v61 = vrot.slane %v989_v56, %v2640_v17  ;;  %v2458_v62 = vpack.c.bf16 %v1146_v7, %v1145_v54  ;;  %v1148_v2 = vmul.f32 %v1098_v53, %v2684_v4  ;;  %v2460_v8 = vpack.c.bf16 %v1130_v15, %v1129_v59 }
  0x68   : > { %2453 = vmatpush3.bf16.msra.mxu0 %v2452_v52  ;;  %v2464_v50 = vpack.c.bf16 %v1132_v11, %v1131_v57  ;;  %v2466_v5 = vpack.c.bf16 %v1150_v60, %v1149_v58  ;;  %v2541_v39 = vmov 2102212464   ;;  %v2542_v41 = vmov 920167782  }
  0x69   : > { %2455 = vmatprep.subr.bf16.mxu0 %v2454_v13  ;;  %v1133_v49 = vmul.f32 %v1070_v61, %v2682_v3  ;;  %v1134_v6 = vmul.f32 %v1070_v61, %v2684_v4  ;;  %v2462_v10 = vpack.c.bf16 %v1148_v2, %v1147_v1  ;;  %v2901_v3 = vld [vmem:[%s411_s30] sm:$0x7]  ;;  %v2543_v44 = vmov 683565275  }
  0x6a   : > { %v2904_v4 = vmul.f32 2.0, %v2901_v3  ;;  %v1236_v20 = vand.u32 2139095040, %v2901_v3  ;;  %v1233_v37 = vand.u32 2147483647, %v2901_v3  ;;  %v2544_v21 = vmov 1326507024  }
  0x6b   : > { %v2468_v9 = vpack.c.bf16 %v1134_v6, %v1133_v49  ;;  %v2545_v47 = vmov 2475754826   ;;  %v2546_v51 = vmov 2131351028   ;;  %vm1235_vm11 = vcmp.lt.s32.totalorder %v2901_v3, 0 }
  0x6c   : > { %2457 = vmatpush3.bf16.msra.mxu0 %v2456_v0  ;;  %v1444_v22 = vand.u32 2139095040, %v2904_v4  ;;  %v1237_v24 = vshrl.u32 %v1236_v20, 23  ;;  %v1240_v29 = vand.u32 8388607, %v1233_v37  ;;  %v1441_v23 = vand.u32 2147483647, %v2904_v4 }
  0x6d   : > { %2459 = vmatprep.subr.bf16.mxu0 %v2458_v62 }
  0x6e   : > { %v1445_v25 = vshrl.u32 %v1444_v22, 23  ;;  %v2178_v26 = vadd.s32 4294967169, %v1237_v24  ;;  %v1241_v6 = vor.u32 8388608, %v1240_v29 }
  0x70   : > { %2461 = vmatpush3.bf16.msra.mxu0 %v2460_v8  ;;  %v2186_v27 = vadd.s32 4294967169, %v1445_v25  ;;  %v1243_v28 = vadd.s32 1, %v2178_v26 }
  0x71   : > { %2463 = vmatprep.subr.bf16.mxu0 %v2462_v10 }
  0x72   : > { %v1451_v30 = vadd.s32 1, %v2186_v27  ;;  %vm1244_vm12 = vcmp.gt.s32.totalorder %v1243_v28, 0 }
  0x73   : > { %v1245_v31 = vsel %vm1244_vm12, %v1243_v28, 0  ;;  %v1281_v28 = vshll.u32 %v1241_v6, 8  ;;  %v1652_v6 = vld [vmem:[%s3164_s4] sm:$0xff]  ;;  %vm1443_vm12 = vcmp.lt.s32.totalorder %v2904_v4, 0 }
  0x74   : > { %2465 = vmatpush3.bf16.msra.mxu0 %v2464_v50  ;;  %vm1452_vm13 = vcmp.gt.s32.totalorder %v1451_v30, 0  ;;  %v1247_v32 = vand.u32 31, %v1245_v31  ;;  %v2916_v43 = vshrl.u32 %v1245_v31, 5 }
  0x75   : > { %2467 = vmatprep.subr.bf16.mxu0 %v2466_v5  ;;  %v1453_v34 = vsel %vm1452_vm13, %v1451_v30, 0  ;;  %v1448_v5 = vand.u32 8388607, %v1441_v23  ;;  %vm3073_vm13 = vcmp.le.f32.partialorder %v1233_v37, 0.7853982 }
  0x76   : > { %v1455_v35 = vand.u32 31, %v1453_v34  ;;  %v2908_v36 = vsub.s32 32, %v1247_v32  ;;  %v1259_v40 = vshll.u32 %v2541_v39, %v1247_v32  ;;  %v1250_v45 = vshll.u32 %v2543_v44, %v1247_v32 }
  0x77   : > { %v1262_v12 = vshll.u32 %v2542_v41, %v1247_v32  ;;  %v1253_v48 = vshll.u32 %v2545_v47, %v1247_v32  ;;  %v1256_v13 = vshll.u32 %v2546_v51, %v1247_v32  ;;  %v2925_v55 = vshrl.u32 %v1453_v34, 5 }
  0x78   : > { %2469 = vmatpush3.bf16.msra.mxu0 %v2468_v9  ;;  %v2911_v38 = vsub.s32 32, %v1455_v35  ;;  %v1260_v42 = vshrl.u32 %v2542_v41, %v2908_v36  ;;  %v1263_v46 = vshrl.u32 %v2544_v21, %v2908_v36  ;;  %v1251_v14 = vshrl.u32 %v2545_v47, %v2908_v36 }
  0x79   : > { %v1254_v52 = vshrl.u32 %v2546_v51, %v2908_v36  ;;  %v1257_v63 = vshrl.u32 %v2541_v39, %v2908_v36  ;;  %v1467_v54 = vshll.u32 %v2541_v39, %v1455_v35  ;;  %v1470_v56 = vshll.u32 %v2542_v41, %v1455_v35 }
  0x7a   : > { %v1261_v53 = vor.u32 %v1260_v42, %v1259_v40  ;;  %v1468_v7 = vshrl.u32 %v2542_v41, %v2911_v38  ;;  %v1471_v0 = vshrl.u32 %v2544_v21, %v2911_v38  ;;  %v1264_v57 = vor.u32 %v1263_v46, %v1262_v12 }
  0x7b   : > { %1221 = vmatmul.mubr.f32.vlgmr.msra.gmra.mrb[4].mxu0 %v2174_v16  ;;  %vm1268_vm14 = vcmp.lt.s32.totalorder %v2916_v43, 4  ;;  %v1458_v11 = vshll.u32 %v2543_v44, %v1455_v35  ;;  %v1459_v58 = vshrl.u32 %v2545_v47, %v2911_v38  ;;  %v1461_v59 = vshll.u32 %v2545_v47, %v1455_v35  ;;  %v1648_v47 = vld [vmem:[%s3163_s3] sm:$0xff] }
  0x7c   : > { %1225 = vmatprep.mubr.f32.mxu0 %v2177_v18  ;;  %v1462_v15 = vshrl.u32 %v2546_v51, %v2911_v38  ;;  %v1464_v60 = vshll.u32 %v2546_v51, %v1455_v35  ;;  %v1465_v61 = vshrl.u32 %v2541_v39, %v2911_v38  ;;  %v1252_v62 = vor.u32 %v1251_v14, %v1250_v45 }
  0x7d   : > { %v1255_v1 = vor.u32 %v1254_v52, %v1253_v48  ;;  %v1469_v2 = vor.u32 %v1468_v7, %v1467_v54  ;;  %v1258_v50 = vor.u32 %v1257_v63, %v1256_v13  ;;  %v1472_v49 = vor.u32 %v1471_v0, %v1470_v56  ;;  %2343 = vmatprep.mubr.msk.f32.mxu1 %vm1676_vm6, %v1648_v47 }
  0x7e   : > { %vm1476_vm15 = vcmp.lt.s32.totalorder %v2925_v55, 4  ;;  %vm1265_vm0 = vcmp.lt.s32.totalorder %v2916_v43, 1  ;;  %vm1267_vm1 = vcmp.lt.s32.totalorder %v2916_v43, 3  ;;  %v1274_v8 = vsel %vm1268_vm14, %v1261_v53, 920167782 }
  0x7f   : > { %1226 = vmatmul.mubr.f32.gmra.mrb[6].mxu0 %v2176_v19  ;;  %v1278_v9 = vsel %vm1268_vm14, %v1264_v57, 1326507024  ;;  %v1460_v10 = vor.u32 %v1459_v58, %v1458_v11  ;;  %v1463_v16 = vor.u32 %v1462_v15, %v1461_v59  ;;  %v1466_v18 = vor.u32 %v1465_v61, %v1464_v60  ;;  %v1855_v60 = vld [vmem:[%s3168_s8] sm:$0xff] }
  0x80   : > { %vm1266_vm2 = vcmp.lt.s32.totalorder %v2916_v43, 2  ;;  %vm1473_vm3 = vcmp.lt.s32.totalorder %v2925_v55, 1  ;;  %vm1475_vm4 = vcmp.lt.s32.totalorder %v2925_v55, 3  ;;  %v1482_v19 = vsel %vm1476_vm15, %v1469_v2, 920167782 }
  0x81   : > { %v1273_v20 = vsel %vm1265_vm0, %v1252_v62, %v1255_v1  ;;  %v1275_v22 = vsel %vm1267_vm1, %v1258_v50, %v1274_v8  ;;  %v1449_v24 = vor.u32 8388608, %v1448_v5  ;;  %v1486_v25 = vsel %vm1476_vm15, %v1472_v49, 1326507024  ;;  %v1653_v8 = vld [vmem:[%s3164_s4 + $0x8] sm:$0xff] }
  0x82   : > { %v1277_v26 = vsel %vm1265_vm0, %v1255_v1, %v1258_v50  ;;  %v1279_v27 = vsel %vm1267_vm1, %v1261_v53, %v1278_v9  ;;  %vm1474_vm5 = vcmp.lt.s32.totalorder %v2925_v55, 2  ;;  %v1481_v30 = vsel %vm1473_vm3, %v1460_v10, %v1463_v16  ;;  %v1857_v55 = vld [vmem:[%s3168_s8 + $0x10] sm:$0xff] }
  0x83   : > { %v1483_v31 = vsel %vm1475_vm4, %v1466_v18, %v1482_v19  ;;  %v1276_v32 = vsel %vm1266_vm2, %v1273_v20, %v1275_v22  ;;  %v1485_v34 = vsel %vm1473_vm3, %v1463_v16, %v1466_v18  ;;  %v1487_v35 = vsel %vm1475_vm4, %v1469_v2, %v1486_v25  ;;  %v1856_v2 = vld [vmem:[%s3168_s8 + $0x8] sm:$0xff]  ;;  %v1778_v22 = vld [vmem:[%s3165_s5] sm:$0xff] }
  0x84   : > { %v1280_v39 = vsel %vm1266_vm2, %v1277_v26, %v1279_v27  ;;  %v1489_v40 = vshll.u32 %v1449_v24, 8  ;;  %v1484_v41 = vsel %vm1474_vm5, %v1481_v30, %v1483_v31  ;;  %v1488_v45 = vsel %vm1474_vm5, %v1485_v34, %v1487_v35  ;;  %v1779_v24 = vld [vmem:[%s3165_s5 + $0x8] sm:$0xff]  ;;  %v1780_v27 = vld [vmem:[%s3165_s5 + $0x10] sm:$0xff]  ;;  %v1986_v34 = vld [vmem:[%s3170_s10] sm:$0x7] }
  0x85   : > { %v2972_v42 = vmul.u32.u64.low %v1281_v28, %v1276_v32  ;;  %v2973_v29 = vmul.u32.u64.high %v1281_v28, %v1276_v32, %v2972_v42  ;;  %v1249_v12 = vshrl.u32 %v2543_v44, %v2908_v36  ;;  %v1270_v14 = vsel %vm1268_vm14, %v1258_v50, 2102212464  ;;  %v1858_v50 = vld [vmem:[%s3168_s8 + $0x18] sm:$0xff]  ;;  %v1820_v32 = vld [vmem:[#allocation2] sm:$0x1] }
  0x86   : > { %v2980_v21 = vmul.u32.u64.low %v1281_v28, %v1280_v39  ;;  %v2981_v46 = vmul.u32.u64.high %v1281_v28, %v1280_v39, %v2980_v21  ;;  %v2988_v48 = vmul.u32.u64.low %v1489_v40, %v1484_v41  ;;  %v2989_v51 = vmul.u32.u64.high %v1489_v40, %v1484_v41, %v2988_v48 }
  0x87   : > { %v1457_v36 = vshrl.u32 %v2543_v44, %v2911_v38  ;;  %v2995_v52 = vmul.u32.u64.low %v1489_v40, %v1488_v45  ;;  %v2996_v13 = vmul.u32.u64.high %v1489_v40, %v1488_v45, %v2995_v52  ;;  %v1478_v63 = vsel %vm1476_vm15, %v1466_v18, 2102212464  ;;  %v1655_v18 = vld [vmem:[%s3164_s4 + $0x18] sm:$0xff] }
  0x88   : > { %v1269_v53 = vsel %vm1265_vm0, %v1249_v12, %v1252_v62  ;;  %v1271_v54 = vsel %vm1267_vm1, %v1255_v1, %v1270_v14  ;;  %v1479_v56 = vsel %vm1475_vm4, %v1463_v16, %v1478_v63  ;;  %v1291_v44 = vadd.s32 1, %v2973_v29  ;;  %v1654_v16 = vld [vmem:[%s3164_s4 + $0x10] sm:$0xff] }
  0x89   : > { %v1477_v7 = vsel %vm1473_vm3, %v1457_v36, %v1460_v10  ;;  %v1272_v38 = vsel %vm1266_vm2, %v1269_v53, %v1271_v54  ;;  %vm1290_vm7 = vc.u32 %v2981_v46, %v2972_v42  ;;  %v1499_v57 = vadd.s32 1, %v2989_v51 }
  0x8a   : > { %v1480_v0 = vsel %vm1474_vm5, %v1477_v7, %v1479_v56  ;;  %v1288_v11 = vmul.u32 %v1281_v28, %v1272_v38  ;;  %vm1498_vm8 = vc.u32 %v2996_v13, %v2988_v48  ;;  %v1292_v58 = vsel %vm1290_vm7, %v1291_v44, %v2973_v29  ;;  %v1781_v28 = vld [vmem:[%s3165_s5 + $0x18] sm:$0xff] }
  0x8b   : > { %v1496_v59 = vmul.u32 %v1489_v40, %v1480_v0  ;;  %v1500_v43 = vsel %vm1498_vm8, %v1499_v57, %v2989_v51  ;;  %v2547_v62 = vmov 0   ;;  %v1289_v14 = vadd.s32 %v2972_v42, %v2981_v46 }
  0x8c   : > { %v1293_v15 = vadd.s32 %v1292_v58, %v1288_v11  ;;  %2521 = vset.pattern.permute.xlu0 %v2547_v62  ;;  %2522 = vset.pattern.permute.xlu1 %v2547_v62  ;;  %v1497_v52 = vadd.s32 %v2988_v48, %v2996_v13  ;;  %vm3081_vm14 = vcmp.le.f32.partialorder %v1441_v23, 0.7853982 }
  0x8d   : > { %v1501_v61 = vadd.s32 %v1500_v43, %v1496_v59  ;;  %1861 = vperm.xlu0 %2521, %v1855_v60   ;;  %1871 = vperm.xlu1 %2522, %v1857_v55  }
  0x8e   : > { %v1294_v1 = vadd.s32 536870912, %v1293_v15 }
  0x8f   : > { %v1502_v5 = vadd.s32 536870912, %v1501_v61 }
  0x90   : > { %v3032_v49 = vshrl.u32 %v1294_v1, 30 }
  0x91   : > { %1866 = vperm.xlu0 %2521, %v1856_v2   ;;  %1876 = vperm.xlu1 %2522, %v1858_v50   ;;  %v3040_v9 = vshrl.u32 %v1502_v5, 30 }
  0x92   : > { %v1296_v10 = vshll.u32 %v3032_v49, 30 }
  0x93   : > { %v1504_v19 = vshll.u32 %v3040_v9, 30  ;;  %v1527_v23 = vsub.s32 4, %v3040_v9 }
  0x94   : > { %v1297_v20 = vsub.s32 %v1293_v15, %v1296_v10 }
  0x95   : > { %1658 = vperm.xlu0 %2521, %v1652_v6   ;;  %1663 = vperm.xlu1 %2522, %v1653_v8   ;;  %v1505_v25 = vsub.s32 %v1501_v61, %v1504_v19 }
  0x96   : > { %v1299_v26 = vsub.s32 0, %v1297_v20 }
  0x97   : > { %v1507_v30 = vsub.s32 0, %v1505_v25 }
  0x98   : > { %v2179_v31 = vmin.u32 %v1299_v26, %v1297_v20 }
  0x99   : > { %1668 = vperm.xlu0 %2521, %v1654_v16   ;;  %1673 = vperm.xlu1 %2522, %v1655_v18   ;;  %v2187_v35 = vmin.u32 %v1507_v30, %v1505_v25 }
  0x9a   : > { %v1301_v39 = vclz %v2179_v31 }
  0x9b   : > { %v1509_v40 = vclz %v2187_v35 }
  0x9c   : > { %v2180_v41 = vadd.s32 4294967294, %v1301_v39 }
  0x9d   : > { %1784 = vperm.xlu0 %2521, %v1778_v22   ;;  %1789 = vperm.xlu1 %2522, %v1779_v24   ;;  %v2188_v29 = vadd.s32 4294967294, %v1509_v40  ;;  %v1319_v24 = vsub.s32 4, %v3032_v49 }
  0x9e   : > { %vm2181_vm9 = vcmp.lt.s32.totalorder %v2180_v41, 0 }
  0x9f   : > { %vm2189_vm10 = vcmp.lt.s32.totalorder %v2188_v29, 0  ;;  %v1304_v45 = vsel %vm2181_vm9, 0, %v2180_v41  ;;  %v1320_v31 = vsel %vm1235_vm11, %v1319_v24, %v3032_v49  ;;  %v1851_v24 = vld [vmem:[%s3167_s7] sm:$0xff] }
  0xa0   : > { %v1512_v12 = vsel %vm2189_vm10, 0, %v2188_v29  ;;  %v1309_v21 = vsub.s32 4294967266, %v1304_v45  ;;  %v1305_v51 = vsub.s32 32, %v1304_v45  ;;  %v1306_v54 = vshll.u32 %v1297_v20, %v1304_v45 }
  0xa1   : > { %1794 = vperm.xlu0 %2521, %v1780_v27   ;;  %1799 = vperm.xlu1 %2522, %v1781_v28   ;;  %v1517_v47 = vsub.s32 4294967266, %v1512_v12  ;;  %v1513_v63 = vsub.s32 32, %v1512_v12  ;;  %v1514_v38 = vshll.u32 %v1505_v25, %v1512_v12 }
  0xa2   : > { %v1310_v36 = vadd.s32 127, %v1309_v21  ;;  %v1307_v7 = vshrl.u32 %v1289_v14, %v1305_v51 }
  0xa3   : > { %v1518_v53 = vadd.s32 127, %v1517_v47  ;;  %v1515_v44 = vshrl.u32 %v1497_v52, %v1513_v63 }
  0xa4   : > { %v1311_v56 = vshll.u32 %v1310_v36, 23  ;;  %v1308_v57 = vor.u32 %v1307_v7, %v1306_v54 }
  0xa5   : > { %1823 = vperm.xlu0 %2521, %v1820_v32   ;;  %1989 = vperm.xlu1 %2522, %v1986_v34   ;;  %v1519_v0 = vshll.u32 %v1518_v53, 23  ;;  %v1516_v58 = vor.u32 %v1515_v44, %v1514_v38  ;;  %v1528_v32 = vsel %vm1443_vm12, %v1527_v23, %v3040_v9  ;;  %v1322_v34 = vsel %vm3073_vm13, 0, %v1320_v31  ;;  %v1854_v23 = vld [vmem:[%s3167_s7 + $0x18] sm:$0xff] }
  0xa6   : > { %v1312_v11 = vor.u32 4788187, %v1311_v56  ;;  %v1315_v15 = vcvt.s32.f32 %v1308_v57  ;;  %v1530_v35 = vsel %vm3081_vm14, 0, %v1528_v32  ;;  %v1326_v39 = vadd.s32 3, %v1322_v34 }
  0xa7   : > { %v1520_v59 = vor.u32 4788187, %v1519_v0  ;;  %v1523_v46 = vcvt.s32.f32 %v1516_v58  ;;  %v1534_v40 = vadd.s32 3, %v1530_v35  ;;  %v1430_v49 = vand.u32 3, %v1322_v34 }
  0xa8   : > { %v1313_v43 = vand.u32 2147483647, %v1312_v11  ;;  %v1327_v12 = vand.u32 3, %v1326_v39  ;;  %v1638_v36 = vand.u32 3, %v1530_v35 }
  0xa9   : > { %v1521_v42 = vand.u32 2147483647, %v1520_v59  ;;  %v1535_v47 = vand.u32 3, %v1534_v40  ;;  %vm1432_vm1 = vcmp.eq.s32.totalorder %v1430_v49, 0  ;;  %vm1435_vm2 = vcmp.eq.s32.totalorder %v1430_v49, 2 }
  0xaa   : > { %v1316_v60 = vmul.f32 %v1315_v15, %v1313_v43  ;;  %vm1329_vm15 = vcmp.eq.s32.totalorder %v1327_v12, 0  ;;  %vm1332_vm0 = vcmp.eq.s32.totalorder %v1327_v12, 2  ;;  %vm1328_vm5 = vcmp.lt.s32.totalorder %v1327_v12, 2 }
  0xab   : > { %v1524_v55 = vmul.f32 %v1523_v46, %v1521_v42  ;;  %vm1537_vm3 = vcmp.eq.s32.totalorder %v1535_v47, 0  ;;  %vm1540_vm4 = vcmp.eq.s32.totalorder %v1535_v47, 2  ;;  %vm1431_vm7 = vcmp.lt.s32.totalorder %v1430_v49, 2 }
  0xac   : > { %v1317_v61 = vxor.u32 2147483648, %v1316_v60  ;;  %vm1536_vm8 = vcmp.lt.s32.totalorder %v1535_v47, 2  ;;  %vm1640_vm9 = vcmp.eq.s32.totalorder %v1638_v36, 0  ;;  %vm1643_vm10 = vcmp.eq.s32.totalorder %v1638_v36, 2 }
  0xad   : > { %v1525_v48 = vxor.u32 2147483648, %v1524_v55 }
  0xae   : > { %v1318_v50 = vsel %vm1235_vm11, %v1317_v61, %v1316_v60  ;;  %vm1325_vm11 = vweird.f32 %v2901_v3 }
  0xaf   : > { %v1526_v16 = vsel %vm1443_vm12, %v1525_v48, %v1524_v55  ;;  %v1321_v37 = vsel %vm3073_vm13, %v2901_v3, %v1318_v50  ;;  %vm1533_vm12 = vweird.f32 %v2904_v4  ;;  %vm1639_vm13 = vcmp.lt.s32.totalorder %v1638_v36, 2 }
  0xb0   : > { %v1529_v27 = vsel %vm3081_vm14, %v2904_v4, %v1526_v16  ;;  %2523 = vcosq.f32 %v1321_v37  ;;  %vm1843_vm14 = vcmask 1042432   ;;  %v1649_v4 = vld [vmem:[%s3163_s3 + $0x8] sm:$0xff] }
  0xb1   : > { %2525 = vsinq.f32 %v1321_v37 }
  0xb2   : > { %2527 = vcosq.f32 %v1529_v27 }
  0xb3   : > { %2529 = vsinq.f32 %v1529_v27  ;;  %v2549_v27 = vmov 0.0|0.0  }
  0xba   : > { %v2524_v41 = vpop.eup %2523 }
  0xbb   : > { %v2526_v29 = vpop.eup %2525  ;;  %v1333_v51 = vxor.u32 2147483648, %v2524_v41 }
  0xbc   : > { %v2528_v45 = vpop.eup %2527  ;;  %v1330_v14 = vxor.u32 2147483648, %v2526_v29 }
  0xbd   : > { %v2530_v21 = vpop.eup %2529  ;;  %v1541_v52 = vxor.u32 2147483648, %v2528_v45  ;;  %v1334_v53 = vsel %vm1332_vm0, %v1333_v51, %v2526_v29  ;;  %v1437_v7 = vsel %vm1435_vm2, %v1333_v51, %v2526_v29  ;;  %vm1845_vm0 = vcmask 1045504  }
  0xbe   : > { %v1538_v9 = vxor.u32 2147483648, %v2530_v21  ;;  %v1331_v63 = vsel %vm1329_vm15, %v2524_v41, %v1330_v14  ;;  %v1434_v54 = vsel %vm1432_vm1, %v2524_v41, %v1330_v14  ;;  %vm1847_vm15 = vcmask 1040384  }
  0xbf   : > { %v1542_v38 = vsel %vm1540_vm4, %v1541_v52, %v2530_v21  ;;  %v1335_v44 = vsel %vm1328_vm5, %v1331_v63, %v1334_v53  ;;  %v1438_v0 = vsel %vm1431_vm7, %v1434_v54, %v1437_v7  ;;  %v1645_v58 = vsel %vm1643_vm10, %v1541_v52, %v2530_v21 }
  0xc0   : > { %v1539_v56 = vsel %vm1537_vm3, %v2528_v45, %v1538_v9  ;;  %v1642_v11 = vsel %vm1640_vm9, %v2528_v45, %v1538_v9  ;;  %v1336_v43 = vsel %vm1325_vm11, nan, %v1335_v44  ;;  %v1439_v42 = vsel %vm1325_vm11, nan, %v1438_v0 }
  0xc1   : > { %v1543_v57 = vsel %vm1536_vm8, %v1539_v56, %v1542_v38  ;;  %v1646_v60 = vsel %vm1639_vm13, %v1642_v11, %v1645_v58  ;;  %v1832_v61 = vrot.slane %v1336_v43, 5  ;;  %vm1849_vm1 = vcmask 1043456  }
  0xc2   : > { %v1544_v46 = vsel %vm1533_vm12, nan, %v1543_v57  ;;  %vm1892_vm2 = vcmask 1046528   ;;  %vm2548_vm3 = vmmov 1   ;;  %vm1879_vm5 = vcmask 252928  }
  0xc3   : > { %v1838_v2 = vrot.slane %v1544_v46, 7  ;;  %v1844_v10 = vsel %vm1843_vm14, %v2901_v3, %v1832_v61  ;;  %vm2479_vm4 = vmpackc.low %vm1892_vm2, %vm2548_vm3  ;;  %v1651_v3 = vld [vmem:[%s3163_s3 + $0x18] sm:$0xff]  ;;  %vm1806_vm7 = vcmask 523264   ;;  %vm1992_vm8 = vcmask 261120  }
  0xc4   : > { %vm2070_vm9 = vcmask 519168  }
 0x12e   : > { %v2238_v13 = vpop.f32.mrb[0].mxu0 }
 0x12f   : > { %v2276_v62 = vpop.f32.mrb[0].mxu1  ;;  %v2239_v1 = vpop.f32.mrb[1].mxu0 }
 0x130   : > { %v2240_v5 = vadd.f32 %v2239_v1, %v2238_v13  ;;  %v2277_v6 = vpop.f32.mrb[1].mxu1  ;;  %v1835_v1 = vrot.slane %v1439_v42, 2 }
 0x131   : > { %v2278_v8 = vadd.f32 %v2277_v6, %v2276_v62  ;;  %v1647_v62 = vsel %vm1533_vm12, nan, %v1646_v60 }
 0x132   : > { %v2241_v18 = vpop.f32.mrb[2].mxu0  ;;  %v1841_v6 = vrot.slane %v1647_v62, 4  ;;  %v1848_v16 = vsel %vm1847_vm15, %v1835_v1, %v1838_v2  ;;  %v1846_v37 = vsel %vm1845_vm0, %v1844_v10, %v1835_v1  ;;  %v1985_v10 = vld [vmem:[%s3169_s9] sm:$0x7] }
 0x133   : > { %v3090_v19 = vadd.f32 %v2278_v8, %v2240_v5  ;;  %v2279_v20 = vpop.f32.mrb[2].mxu1  ;;  %v2242_v22 = vpop.f32.mrb[3].mxu0 }
 0x134   : > { %v2243_v25 = vadd.f32 %v2242_v22, %v2241_v18  ;;  %v2280_v26 = vpop.f32.mrb[3].mxu1 }
 0x135   : > { %v2281_v28 = vadd.f32 %v2280_v26, %v2279_v20  ;;  %v1650_v20 = vld [vmem:[%s3163_s3 + $0x10] sm:$0xff] }
 0x136   : > { %v1853_v26 = vld [vmem:[%s3167_s7 + $0x10] sm:$0xff] }
 0x137   : > { %v3097_v30 = vadd.f32 %v2281_v28, %v2243_v25  ;;  %v1852_v25 = vld [vmem:[%s3167_s7 + $0x8] sm:$0xff]  ;;  %v1862_v28 = vpop.permute.xlu0 %1861 }
 0x13b   : > { %v1867_v31 = vpop.permute.xlu0 %1866 }
 0x13f   : > { %v1659_v34 = vpop.permute.xlu0 %1658 }
 0x143   : > { %v1669_v39 = vpop.permute.xlu0 %1668 }
 0x147   : > { %v1785_v12 = vpop.permute.xlu0 %1784 }
 0x14b   : > { %v1795_v56 = vpop.permute.xlu0 %1794 }
 0x14e   : > { %v2314_v59 = vpop.f32.mrb[4].mxu0 }
 0x14f   : > { %v2315_v15 = vpop.f32.mrb[5].mxu0 }
 0x150   : > { %v2316_v55 = vadd.f32 %v2315_v15, %v2314_v59 }
 0x152   : > { %v1231_v48 = vadd.f32 %v2316_v55, %v3090_v19  ;;  %v2317_v13 = vpop.f32.mrb[6].mxu0  ;;  %v1850_v19 = vsel %vm1849_vm1, %v1848_v16, %v1841_v6 }
 0x153   : > { %v2318_v50 = vpop.f32.mrb[7].mxu0  ;;  %v2478_v22 = vpack.c.bf16 %v1850_v19, %v1846_v37 }
 0x154   : > { %v2319_v5 = vadd.f32 %v2318_v50, %v2317_v13 }
 0x156   : > { %v1232_v8 = vadd.f32 %v2319_v5, %v3097_v30  ;;  %v1872_v30 = vpop.permute.xlu1 %1871 }
 0x158   : > { %v2470_v18 = vpack.c.bf16 %v1232_v8, %v1231_v48 }
 0x15a   : > { %2471 = vmatprep.subr.bf16.mxu1 %v2470_v18  ;;  %v1877_v32 = vpop.permute.xlu1 %1876 }
 0x15b   : > { %2473 = vmatpush3.bf16.msra.mxu1 %v2470_v18 }
 0x15c   : > { %2475 = vmatprep.subr.bf16.mxu1 %v2470_v18 }
 0x15e   : > { %2344 = vmatmul.mubr.msk.f32.vlgmr.msra.gmra.mrb[4].mxu1 %vm1676_vm6, %v1649_v4  ;;  %v1664_v35 = vpop.permute.xlu1 %1663 }
 0x15f   : > { %2477 = vmatpush3.bf16.msra.mxu1 %v2470_v18  ;;  %2346 = vmatprep.mubr.msk.f32.mxu1 %vm1676_vm6, %v1650_v20  ;;  %v1824_v20 = vpop.permute.xlu0 %1823 }
 0x160   : > { %2480 = vmatprep.subr.msk.bf16.mxu1 %vm2479_vm4, %v2478_v22 }
 0x162   : > { %2347 = vmatmul.mubr.msk.f32.gmra.mrb[6].mxu1 %vm1676_vm6, %v1651_v3  ;;  %vm2550_vm6 = vmmov 0   ;;  %v1674_v40 = vpop.permute.xlu1 %1673 }
 0x163   : > { %2483 = vmatpush3.bf16.msk.msra.mxu1 %vm2479_vm4, %v2478_v22  ;;  %2357 = vmatprep.mubr.msk.f32.mxu1 %vm1879_vm5, %v1851_v24 }
 0x164   : > { %2484 = vmatprep.subr.bf16.mxu1 %v2549_v27 }
 0x166   : > { %2358 = vmatmul.mubr.msk.f32.vlgmr.msra.gmra.mrb[8].mxu1 %vm1879_vm5, %v1852_v25  ;;  %v1790_v47 = vpop.permute.xlu1 %1789  ;;  %v1829_v25 = vrot.slane %v1824_v20, %v2640_v17 }
 0x167   : > { %2360 = vmatprep.mubr.msk.f32.mxu1 %vm1879_vm5, %v1853_v26 }
 0x16a   : > { %2361 = vmatmul.mubr.msk.f32.gmra.mrb[10].mxu1 %vm1879_vm5, %v1854_v23  ;;  %v1800_v11 = vpop.permute.xlu1 %1799 }
 0x16b   : > { %2371 = vmatprep.mubr.msk.f32.mxu1 %vm2550_vm6, %v2540_v33 }
 0x16e   : > { %v1990_v3 = vpop.permute.xlu1 %1989 }
 0x231   : > { %v2345_v41 = vpop.f32.mrb[4].mxu1 }
 0x232   : > { %v1761_v29 = vadd.f32 %v2345_v41, %v1664_v35  ;;  %v1755_v45 = vpop.f32.mrb[5].mxu1 }
 0x233   : > { %v1756_v21 = vadd.f32 %v1755_v45, %v1659_v34 }
 0x234   : > { %v1775_v49 = vmax.f32 %v1761_v29, 0.0 }
 0x235   : > { %v1774_v14 = vmax.f32 %v1756_v21, 0.0  ;;  %v2348_v51 = vpop.f32.mrb[6].mxu1 }
 0x236   : > { %v1771_v36 = vadd.f32 %v2348_v51, %v1674_v40  ;;  %v1803_v33 = vmul.f32 %v1790_v47, %v1775_v49  ;;  %v1765_v9 = vpop.f32.mrb[7].mxu1 }
 0x237   : > { %v1802_v52 = vmul.f32 %v1785_v12, %v1774_v14  ;;  %v1766_v63 = vadd.f32 %v1765_v9, %v1669_v39 }
 0x238   : > { %v1777_v53 = vmax.f32 %v1771_v36, 0.0  ;;  %v1808_v54 = vsel %vm1806_vm7, %v1803_v33, 0.0 }
 0x239   : > { %v1807_v7 = vsel %vm1806_vm7, %v1802_v52, 0.0  ;;  %v1776_v38 = vmax.f32 %v1766_v63, 0.0  ;;  %v2359_v44 = vpop.f32.mrb[8].mxu1 }
 0x23a   : > { %v1809_v0 = vadd.f32 %v1808_v54, %v1807_v7  ;;  %v1968_v57 = vadd.f32 %v2359_v44, %v1867_v31  ;;  %v1962_v58 = vpop.f32.mrb[9].mxu1  ;;  %v1805_v43 = vmul.f32 %v1800_v11, %v1777_v53 }
 0x23b   : > { %v1804_v59 = vmul.f32 %v1795_v56, %v1776_v38  ;;  %v1963_v15 = vadd.f32 %v1962_v58, %v1862_v28 }
 0x23c   : > { %v1982_v42 = vmax.f32 %v1968_v57, 0.0  ;;  %v1812_v62 = vsel %vm1806_vm7, %v1805_v43, 0.0 }
 0x23d   : > { %v1810_v46 = vsel %vm1806_vm7, %v1804_v59, 0.0  ;;  %v1981_v60 = vmax.f32 %v1963_v15, 0.0  ;;  %v2362_v55 = vpop.f32.mrb[10].mxu1 }
 0x23e   : > { %v1811_v61 = vadd.f32 %v1810_v46, %v1809_v0  ;;  %v1978_v48 = vadd.f32 %v2362_v55, %v1877_v32  ;;  %v1972_v13 = vpop.f32.mrb[11].mxu1 }
 0x23f   : > { %v2485_v1 = vpack.c.bf16 %v1982_v42, %v1981_v60  ;;  %v1973_v2 = vadd.f32 %v1972_v13, %v1872_v30 }
 0x240   : > { %v1813_v50 = vadd.f32 %v1812_v62, %v1811_v61  ;;  %v1984_v5 = vmax.f32 %v1978_v48, 0.0 }
 0x241   : > { %v1983_v6 = vmax.f32 %v1973_v2, 0.0  ;;  %2486 = vmatpush3.bf16.msra.mxu1 %v2485_v1 }
 0x242   : > { %2487 = vmatprep.subr.bf16.mxu1 %v2549_v27  ;;  %v1814_v16 = vrot.slane %v1813_v50, 4 }
 0x243   : > { %v2488_v8 = vpack.c.bf16 %v1984_v5, %v1983_v6 }
 0x244   : > { %v1815_v18 = vadd.f32 %v1814_v16, %v1813_v50 }
 0x245   : > { %2489 = vmatpush3.bf16.msra.mxu1 %v2488_v8 }
 0x246   : > { %v1816_v37 = vrot.slane %v1815_v18, 2 }
 0x248   : > { %2372 = vmatmul.mubr.msk.f32.vlgmr.msra.gmra.mrb[12].mxu1 %vm1992_vm8, %v1985_v10  ;;  %v1817_v19 = vadd.f32 %v1816_v37, %v1815_v18 }
 0x24a   : > { %v1818_v4 = vrot.slane %v1817_v19, 1 }
 0x24c   : > { %v1819_v22 = vadd.f32 %v1818_v4, %v1817_v19 }
 0x24e   : > { %v1830_v27 = vadd.f32 %v1829_v25, %v1819_v22 }
 0x31b   : > { %v2062_v24 = vpop.f32.mrb[12].mxu1 }
 0x31c   : > { %v2063_v26 = vadd.f32 %v2062_v24, %v1990_v3  ;;  %v2373_v23 = vpop.f32.mrb[13].mxu1 }
 0x31e   : > { %v2067_v28 = vrot.slane %v2063_v26, 7 }
 0x320   : > { %v2069_v30 = vsel %vm1847_vm15, %v1830_v27, %v2067_v28 }
 0x321   : > { %2071 = vst.msk [vmem:[%s420_s23] sm:$0xf] %vm2070_vm9, %v2069_v30 }
 0x322 PF: > { %s23_s19 = sadd.s32 1, %s2537_s19  }
 0x323   : > { %p20_p4 = scmp.ge.s32.totalorder %s23_s19, 4  }
 0x325   :  { %22 = sbr.rel (!%p20_p4) target bundleno = 3 (0x3), region = 102 }

</bundles_post_ra>
